<compile_context>
chip_gen: v7x
topology: tpu7x:2x2x1
jax: 0.10.0
libtpu: 0.0.40
codegen_flags: <defaults>
</compile_context>

<pallas_src>
import functools

import jax
import jax.numpy as jnp
from jax import lax
from jax.experimental import pallas as pl
from jax.experimental.pallas import tpu as pltpu

_VMEM_LIMIT = 40 * 1024 * 1024  # 40 MiB: > v5e default scoped, < v7x physical


# ----------------------------------------------------------------------------
# helpers
# ----------------------------------------------------------------------------
def _round_up(n, m):
    return (n + m - 1) // m * m


def _pad_to(a, axis, target):
    pad = target - a.shape[axis]
    if pad == 0:
        return a
    widths = [(0, 0)] * a.ndim
    widths[axis] = (0, pad)
    return jnp.pad(a, widths)


# ----------------------------------------------------------------------------
# Kernel 1: fc1 + relu, K-tiled reduction, FEAT-split parallel axis
# ----------------------------------------------------------------------------
def _fc1_kernel(x_ref, w1_ref, b1_ref, h1_ref, acc_ref):
    k = pl.program_id(1)

    @pl.when(k == 0)
    def _():
        acc_ref[...] = jnp.zeros_like(acc_ref)

    # partial fc1: acc += x[:, k-chunk] @ W1[k-chunk, f-half]  (bf16 MXU, f32 acc)
    acc_ref[...] += jnp.dot(x_ref[...], w1_ref[...],
                            preferred_element_type=jnp.float32)

    @pl.when(k == pl.num_programs(1) - 1)
    def _():
        h1_ref[...] = jnp.maximum(acc_ref[...] + b1_ref[...],
                                  0.0).astype(h1_ref.dtype)


# ----------------------------------------------------------------------------
# Kernel 2: fused fc21 || fc22, reparameterize, fc3 + relu (tiny, single shot)
# ----------------------------------------------------------------------------
def _latent_kernel(h1_ref, eps_ref, w2_ref, b2_ref, w3_ref, b3_ref,
                   h3_ref, ml_ref):
    # fused fc21 || fc22 -> (B, 2*ENC) lane-dense
    ml = jnp.dot(h1_ref[...], w2_ref[...],
                 preferred_element_type=jnp.float32) + b2_ref[...]
    enc = eps_ref.shape[-1]
    mu = ml[:, :enc]
    logvar = ml[:, enc:]

    # reparameterize: z = eps * exp(0.5 * logvar) + mu
    # (unclamped exp, matching the PyTorch reference)
    z = eps_ref[...] * jnp.exp(0.5 * logvar) + mu

    # fc3 + relu, stored bf16 for the decoder matmul
    h3 = jnp.dot(z.astype(jnp.bfloat16), w3_ref[...],
                 preferred_element_type=jnp.float32) + b3_ref[...]
    h3_ref[...] = jnp.maximum(h3, 0.0).astype(h3_ref.dtype)
    ml_ref[...] = ml


# ----------------------------------------------------------------------------
# Kernel 3: fc4 (N-tiled, W4 pre-transposed -> contiguous row slabs) + sigmoid
# ----------------------------------------------------------------------------
def _decode_kernel(h3_ref, w4t_ref, b4_ref, recon_ref):
    # h3: (B, FEAT), w4t block: (n_tile, FEAT)  ->  contract FEAT (trans-B)
    logits = lax.dot_general(
        h3_ref[...], w4t_ref[...],
        dimension_numbers=(((1,), (1,)), ((), ())),
        preferred_element_type=jnp.float32) + b4_ref[...]
    # exact sigmoid (HBM-bound kernel: exact reciprocal is free)
    recon_ref[...] = 1.0 / (1.0 + jnp.exp(-logits))


# ----------------------------------------------------------------------------
# Wrapper
# ----------------------------------------------------------------------------
@functools.partial(jax.jit, static_argnames=("img_dim", "k_tile", "n_tile"))
def vae_forward(x, eps, params, *, img_dim, k_tile=4096, n_tile=4096):
    """x: anything that flattens to (-1, img_dim); eps: (B, enc_dim) noise."""
    x2d = x.reshape(-1, img_dim).astype(jnp.float32)
    B = x2d.shape[0]
    feat_dim = params["w1"].shape[1]
    enc_dim = params["w21"].shape[1]

    # ---- TPU-friendly padded sizes (zero padding is exact for this net) ----
    B_P = _round_up(B, 16)                       # sublanes (bf16 packs 16)
    FEAT_P = _round_up(feat_dim, 128)            # lane-dense
    ENC_P = _round_up(enc_dim, 64)               # 2*ENC_P % 128 == 0

    # clamp tiles for small problems; keep multiples of 256 (>=128 lanes)
    k_tile = min(k_tile, _round_up(img_dim, 256))
    n_tile = min(n_tile, _round_up(img_dim, 256))
    IMG_PK = _round_up(img_dim, k_tile)          # encoder K padding
    IMG_PN = _round_up(img_dim, n_tile)          # decoder N padding

    # split FEAT across a parallel grid axis so both TCs stream W1 on v7x
    feat_split = 2 if FEAT_P % 256 == 0 else 1
    f_tile = FEAT_P // feat_split

    bf = jnp.bfloat16
    xp = _pad_to(_pad_to(x2d, 0, B_P), 1, IMG_PK).astype(bf)
    epsp = _pad_to(_pad_to(eps.astype(jnp.float32), 0, B_P), 1, ENC_P)

    w1 = _pad_to(_pad_to(params["w1"], 0, IMG_PK), 1, FEAT_P).astype(bf)
    b1 = _pad_to(params["b1"], 1, FEAT_P)
    w2 = _pad_to(jnp.concatenate([_pad_to(params["w21"], 1, ENC_P),
                                  _pad_to(params["w22"], 1, ENC_P)], axis=1),
                 0, FEAT_P).astype(bf)
    b2 = jnp.concatenate([_pad_to(params["b21"], 1, ENC_P),
                          _pad_to(params["b22"], 1, ENC_P)], axis=1)
    w3 = _pad_to(_pad_to(params["w3"], 0, ENC_P), 1, FEAT_P).astype(bf)
    b3 = _pad_to(params["b3"], 1, FEAT_P)
    # pre-transpose W4 -> (IMG, FEAT): contiguous (n_tile, FEAT) row slabs
    w4t = _pad_to(_pad_to(params["w4"].T, 0, IMG_PN), 1, FEAT_P).astype(bf)
    b4 = _pad_to(params["b4"], 1, IMG_PN)

    # --------------------- Kernel 1: fc1 + relu -----------------------------
    h1 = pl.pallas_call(
        _fc1_kernel,
        out_shape=jax.ShapeDtypeStruct((B_P, FEAT_P), bf),
        grid_spec=pltpu.PrefetchScalarGridSpec(
            num_scalar_prefetch=0,
            grid=(feat_split, IMG_PK // k_tile),
            in_specs=[
                pl.BlockSpec((B_P, k_tile), lambda f, k: (0, k)),     # x chunk
                pl.BlockSpec((k_tile, f_tile), lambda f, k: (k, f)),  # W1 (streamed)
                pl.BlockSpec((1, f_tile), lambda f, k: (0, f)),       # b1 half
            ],
            out_specs=pl.BlockSpec((B_P, f_tile), lambda f, k: (0, f)),
            scratch_shapes=[pltpu.VMEM((B_P, f_tile), jnp.float32)],  # fc1 acc
        ),
        compiler_params=pltpu.CompilerParams(
            dimension_semantics=("parallel", "arbitrary"),
            vmem_limit_bytes=_VMEM_LIMIT),
        cost_estimate=pl.CostEstimate(
            flops=int(2 * B_P * IMG_PK * FEAT_P),
            transcendentals=0,
            bytes_accessed=int(w1.size * 2 + xp.size * 2 * feat_split
                               + b1.size * 4 + B_P * FEAT_P * 2)),
    )(xp, w1, b1)

    # --------------------- Kernel 2: latent epilogue ------------------------
    h3, ml = pl.pallas_call(
        _latent_kernel,
        out_shape=(jax.ShapeDtypeStruct((B_P, FEAT_P), bf),
                   jax.ShapeDtypeStruct((B_P, 2 * ENC_P), jnp.float32)),
        cost_estimate=pl.CostEstimate(
            flops=int(2 * B_P * (FEAT_P * 2 * ENC_P + ENC_P * FEAT_P)),
            transcendentals=int(B_P * ENC_P),
            bytes_accessed=int(w2.size * 2 + w3.size * 2
                               + (b2.size + b3.size + epsp.size) * 4
                               + 2 * B_P * FEAT_P * 2 + B_P * 2 * ENC_P * 4)),
    )(h1, epsp, w2, b2, w3, b3)

    # --------------------- Kernel 3: fc4 + sigmoid --------------------------
    recon_p = pl.pallas_call(
        _decode_kernel,
        out_shape=jax.ShapeDtypeStruct((B_P, IMG_PN), jnp.float32),
        grid_spec=pltpu.PrefetchScalarGridSpec(
            num_scalar_prefetch=0,
            grid=(IMG_PN // n_tile,),
            in_specs=[
                pl.BlockSpec((B_P, FEAT_P), lambda j: (0, 0)),        # h3 resident
                pl.BlockSpec((n_tile, FEAT_P), lambda j: (j, 0)),     # W4^T row slab
                pl.BlockSpec((1, n_tile), lambda j: (0, j)),          # b4 chunk
            ],
            out_specs=pl.BlockSpec((B_P, n_tile), lambda j: (0, j)),  # recon chunk
        ),
        compiler_params=pltpu.CompilerParams(
            dimension_semantics=("parallel",),
            vmem_limit_bytes=_VMEM_LIMIT),
        cost_estimate=pl.CostEstimate(
            flops=int(2 * B_P * FEAT_P * IMG_PN),
            transcendentals=int(B_P * IMG_PN),
            bytes_accessed=int(w4t.size * 2 + b4.size * 4
                               + B_P * FEAT_P * 2 + B_P * IMG_PN * 4)),
    )(h3, w4t, b4)

    recon = recon_p[:B, :img_dim]
    mu = ml[:B, :enc_dim]
    logvar = ml[:B, ENC_P:ENC_P + enc_dim]
    return recon, mu, logvar


# ----------------------------------------------------------------------------
# Deterministic parameter init (PyTorch nn.Linear-style uniform bounds);
# weights stored as (in_features, out_features) == W^T of the PyTorch weight.
# ----------------------------------------------------------------------------
def init_vae_params(key, img_dim, feat_dim, enc_dim):
    def linear(key, fan_in, fan_out):
        kw, kb = jax.random.split(key)
        bound = 1.0 / jnp.sqrt(jnp.float32(fan_in))
        w = jax.random.uniform(kw, (fan_in, fan_out), jnp.float32, -bound, bound)
        b = jax.random.uniform(kb, (1, fan_out), jnp.float32, -bound, bound)
        return w, b

    k1, k21, k22, k3, k4 = jax.random.split(key, 5)
    w1, b1 = linear(k1, img_dim, feat_dim)      # fc1
    w21, b21 = linear(k21, feat_dim, enc_dim)   # fc21 (mu)
    w22, b22 = linear(k22, feat_dim, enc_dim)   # fc22 (logvar)
    w3, b3 = linear(k3, enc_dim, feat_dim)      # fc3
    w4, b4 = linear(k4, feat_dim, img_dim)      # fc4
    return dict(w1=w1, b1=b1, w21=w21, b21=b21, w22=w22, b22=b22,
                w3=w3, b3=b3, w4=w4, b4=b4)


# ----------------------------------------------------------------------------
# Pure-JAX reference (same bf16-operand / f32-accumulate recipe as the kernel)
# ----------------------------------------------------------------------------
def vae_forward_ref(x, eps, p, img_dim):
    x2d = x.reshape(-1, img_dim).astype(jnp.float32)
    bf = lambda a: a.astype(jnp.bfloat16)
    dot = lambda a, b: jnp.dot(bf(a), bf(b), preferred_element_type=jnp.float32)
    h1 = jax.nn.relu(dot(x2d, p["w1"]) + p["b1"])
    mu = dot(h1, p["w21"]) + p["b21"]
    logvar = dot(h1, p["w22"]) + p["b22"]
    z = eps * jnp.exp(0.5 * logvar) + mu
    h3 = jax.nn.relu(dot(z, p["w3"]) + p["b3"])
    recon = jax.nn.sigmoid(dot(h3, p["w4"]) + p["b4"])
    return recon, mu, logvar


if __name__ == "__main__":
    # Small shapes consistent with the module's forward:
    # input_image_channels=3, spatial 16x16 -> img_dim = 768
    B, C, H, W = 2, 3, 16, 16
    IMG_DIM = C * H * W          # 768  (real model: 3*480*640 = 921600)
    FEAT_DIM = 256               # stands in for feature_dimensions=1000
    ENC_DIM = 64                 # stands in for encoding_dimensions=40

    key = jax.random.PRNGKey(0)
    k_x, k_eps, k_params = jax.random.split(key, 3)

    x = jax.random.uniform(k_x, (B, C, H, W), jnp.float32)
    # eps ~ N(0,1): the torch.randn_like in reparameterize, made explicit.
    eps = jax.random.normal(k_eps, (B, ENC_DIM), jnp.float32)

    params = init_vae_params(k_params, IMG_DIM, FEAT_DIM, ENC_DIM)

    recon, mu, logvar = vae_forward(x, eps, params, img_dim=IMG_DIM)
    jax.block_until_ready((recon, mu, logvar))

    # sanity check vs plain-JAX reference
    r_ref, mu_ref, lv_ref = vae_forward_ref(x, eps, params, IMG_DIM)
    assert recon.shape == (B, IMG_DIM)
    assert mu.shape == (B, ENC_DIM) and logvar.shape == (B, ENC_DIM)
    assert jnp.allclose(recon, r_ref, atol=1e-2, rtol=1e-2)
    assert jnp.allclose(mu, mu_ref, atol=1e-2, rtol=1e-2)
    assert jnp.allclose(logvar, lv_ref, atol=1e-2, rtol=1e-2)

    print("KERNEL_OK")
</pallas_src>

<mosaic_0001>
module attributes {stable_mosaic.version = 11 : i64} {
  func.func @_fc1_kernel(%arg0: i32, %arg1: i32, %arg2: memref<16x768xbf16, #tpu.memory_space<vmem>>, %arg3: memref<768x128xbf16, #tpu.memory_space<vmem>>, %arg4: memref<1x128xf32, #tpu.memory_space<vmem>>, %arg5: memref<16x128xbf16, #tpu.memory_space<vmem>>, %arg6: memref<16x128xf32, #tpu.memory_space<vmem>>) attributes {dimension_semantics = [#tpu.dimension_semantics<parallel>, #tpu.dimension_semantics<arbitrary>], iteration_bounds = array<i64: 2, 1>, scalar_prefetch = 0 : i64, scratch_operands = 1 : i64, tpu.core_type = #tpu.core_type<tc>, window_params = [{transform_indices = @transform_0, window_bounds = array<i64: 16, 768>}, {transform_indices = @transform_1, window_bounds = array<i64: 768, 128>}, {transform_indices = @transform_2, window_bounds = array<i64: 1, 128>}, {transform_indices = @transform_3, window_bounds = array<i64: 16, 128>}]} {
    %c0_i32 = arith.constant 0 : i32
    %0 = arith.cmpi eq, %arg1, %c0_i32 : i32
    %1 = arith.extui %0 : i1 to i32
    %c0_i32_0 = arith.constant 0 : i32
    %2 = arith.cmpi ne, %1, %c0_i32_0 : i32
    scf.if %2 {
      %cst_10 = arith.constant 0.000000e+00 : f32
      %12 = vector.broadcast %cst_10 : f32 to vector<16x128xf32>
      %c0_11 = arith.constant 0 : index
      %c0_12 = arith.constant 0 : index
      %13 = vector.load %arg6[%c0_11, %c0_12] : memref<16x128xf32, #tpu.memory_space<vmem>>, vector<16x128xf32>
      tpu.vector_store %arg6[%c0_11, %c0_12], %12 {strides = array<i32>} : memref<16x128xf32, #tpu.memory_space<vmem>>, vector<16x128xf32>,
    } else {
    }
    %c0 = arith.constant 0 : index
    %c0_1 = arith.constant 0 : index
    %3 = vector.load %arg6[%c0, %c0_1] : memref<16x128xf32, #tpu.memory_space<vmem>>, vector<16x128xf32>
    %c0_2 = arith.constant 0 : index
    %c0_3 = arith.constant 0 : index
    %4 = vector.load %arg2[%c0_2, %c0_3] : memref<16x768xbf16, #tpu.memory_space<vmem>>, vector<16x768xbf16>
    %c0_4 = arith.constant 0 : index
    %c0_5 = arith.constant 0 : index
    %5 = vector.load %arg3[%c0_4, %c0_5] : memref<768x128xbf16, #tpu.memory_space<vmem>>, vector<768x128xbf16>
    %cst = arith.constant dense<0.000000e+00> : vector<16x128xf32>
    %6 = tpu.matmul %4, %5, %cst {dimension_numbers = #tpu.dot_dimension_numbers<[1], [0], [0], [1], [0, 0, 1, 1], [], []>} : vector<16x768xbf16>, vector<768x128xbf16>, vector<16x128xf32> -> vector<16x128xf32>
    %7 = arith.addf %3, %6 : vector<16x128xf32>
    %c0_6 = arith.constant 0 : index
    %c0_7 = arith.constant 0 : index
    %8 = vector.load %arg6[%c0_6, %c0_7] : memref<16x128xf32, #tpu.memory_space<vmem>>, vector<16x128xf32>
    tpu.vector_store %arg6[%c0_6, %c0_7], %7 {strides = array<i32>} : memref<16x128xf32, #tpu.memory_space<vmem>>, vector<16x128xf32>,
    %c0_i32_8 = arith.constant 0 : i32
    %9 = arith.cmpi eq, %arg1, %c0_i32_8 : i32
    %10 = arith.extui %9 : i1 to i32
    %c0_i32_9 = arith.constant 0 : i32
    %11 = arith.cmpi ne, %10, %c0_i32_9 : i32
    scf.if %11 {
      %c0_10 = arith.constant 0 : index
      %c0_11 = arith.constant 0 : index
      %12 = vector.load %arg6[%c0_10, %c0_11] : memref<16x128xf32, #tpu.memory_space<vmem>>, vector<16x128xf32>
      %c0_12 = arith.constant 0 : index
      %c0_13 = arith.constant 0 : index
      %13 = vector.load %arg4[%c0_12, %c0_13] : memref<1x128xf32, #tpu.memory_space<vmem>>, vector<1x128xf32>
      %14 = vector.broadcast %13 : vector<1x128xf32> to vector<16x128xf32>
      %15 = arith.addf %12, %14 : vector<16x128xf32>
      %cst_14 = arith.constant 0.000000e+00 : f32
      %16 = vector.broadcast %cst_14 : f32 to vector<16x128xf32>
      %17 = arith.maximumf %15, %16 : vector<16x128xf32>
      %18 = arith.truncf %17 : vector<16x128xf32> to vector<16x128xbf16>
      %c0_15 = arith.constant 0 : index
      %c0_16 = arith.constant 0 : index
      %19 = vector.load %arg5[%c0_15, %c0_16] : memref<16x128xbf16, #tpu.memory_space<vmem>>, vector<16x128xbf16>
      tpu.vector_store %arg5[%c0_15, %c0_16], %18 {strides = array<i32>} : memref<16x128xbf16, #tpu.memory_space<vmem>>, vector<16x128xbf16>,
    } else {
    }
    return
  }
  func.func @transform_0(%arg0: i32, %arg1: i32) -> (i32, i32) {
    %c0_i32 = arith.constant 0 : i32
    %c0_i32_0 = arith.constant 0 : i32
    return %c0_i32, %arg1 : i32, i32
  }
  func.func @transform_1(%arg0: i32, %arg1: i32) -> (i32, i32) {
    %c0_i32 = arith.constant 0 : i32
    return %arg1, %arg0 : i32, i32
  }
  func.func @transform_2(%arg0: i32, %arg1: i32) -> (i32, i32) {
    %c0_i32 = arith.constant 0 : i32
    %c0_i32_0 = arith.constant 0 : i32
    return %c0_i32, %arg0 : i32, i32
  }
  func.func @transform_3(%arg0: i32, %arg1: i32) -> (i32, i32) {
    %c0_i32 = arith.constant 0 : i32
    %c0_i32_0 = arith.constant 0 : i32
    return %c0_i32, %arg0 : i32, i32
  }
}

module attributes {stable_mosaic.version = 11 : i64} {
  func.func @_latent_kernel(%arg0: memref<16x256xbf16, #tpu.memory_space<vmem>>, %arg1: memref<16x64xf32, #tpu.memory_space<vmem>>, %arg2: memref<256x128xbf16, #tpu.memory_space<vmem>>, %arg3: memref<1x128xf32, #tpu.memory_space<vmem>>, %arg4: memref<64x256xbf16, #tpu.memory_space<vmem>>, %arg5: memref<1x256xf32, #tpu.memory_space<vmem>>, %arg6: memref<16x256xbf16, #tpu.memory_space<vmem>>, %arg7: memref<16x128xf32, #tpu.memory_space<vmem>>) attributes {dimension_semantics = [], scalar_prefetch = 0 : i64, scratch_operands = 0 : i64, tpu.core_type = #tpu.core_type<tc>} {
    %c0 = arith.constant 0 : index
    %c0_0 = arith.constant 0 : index
    %0 = vector.load %arg0[%c0, %c0_0] : memref<16x256xbf16, #tpu.memory_space<vmem>>, vector<16x256xbf16>
    %c0_1 = arith.constant 0 : index
    %c0_2 = arith.constant 0 : index
    %1 = vector.load %arg2[%c0_1, %c0_2] : memref<256x128xbf16, #tpu.memory_space<vmem>>, vector<256x128xbf16>
    %cst = arith.constant dense<0.000000e+00> : vector<16x128xf32>
    %2 = tpu.matmul %0, %1, %cst {dimension_numbers = #tpu.dot_dimension_numbers<[1], [0], [0], [1], [0, 0, 1, 1], [], []>} : vector<16x256xbf16>, vector<256x128xbf16>, vector<16x128xf32> -> vector<16x128xf32>
    %c0_3 = arith.constant 0 : index
    %c0_4 = arith.constant 0 : index
    %3 = vector.load %arg3[%c0_3, %c0_4] : memref<1x128xf32, #tpu.memory_space<vmem>>, vector<1x128xf32>
    %4 = vector.broadcast %3 : vector<1x128xf32> to vector<16x128xf32>
    %5 = arith.addf %2, %4 : vector<16x128xf32>
    %6 = vector.extract_strided_slice %5 {offsets = [0, 0], sizes = [16, 64], strides = [1, 1]} : vector<16x128xf32> to vector<16x64xf32>
    %7 = vector.extract_strided_slice %5 {offsets = [0, 64], sizes = [16, 64], strides = [1, 1]} : vector<16x128xf32> to vector<16x64xf32>
    %c0_5 = arith.constant 0 : index
    %c0_6 = arith.constant 0 : index
    %8 = vector.load %arg1[%c0_5, %c0_6] : memref<16x64xf32, #tpu.memory_space<vmem>>, vector<16x64xf32>
    %cst_7 = arith.constant 5.000000e-01 : f32
    %9 = vector.broadcast %cst_7 : f32 to vector<16x64xf32>
    %10 = arith.mulf %9, %7 : vector<16x64xf32>
    %11 = math.exp %10 : vector<16x64xf32>
    %12 = arith.mulf %8, %11 : vector<16x64xf32>
    %13 = arith.addf %12, %6 : vector<16x64xf32>
    %14 = arith.truncf %13 : vector<16x64xf32> to vector<16x64xbf16>
    %c0_8 = arith.constant 0 : index
    %c0_9 = arith.constant 0 : index
    %15 = vector.load %arg4[%c0_8, %c0_9] : memref<64x256xbf16, #tpu.memory_space<vmem>>, vector<64x256xbf16>
    %cst_10 = arith.constant dense<0.000000e+00> : vector<16x256xf32>
    %16 = tpu.matmul %14, %15, %cst_10 {dimension_numbers = #tpu.dot_dimension_numbers<[1], [0], [0], [1], [0, 0, 1, 1], [], []>} : vector<16x64xbf16>, vector<64x256xbf16>, vector<16x256xf32> -> vector<16x256xf32>
    %c0_11 = arith.constant 0 : index
    %c0_12 = arith.constant 0 : index
    %17 = vector.load %arg5[%c0_11, %c0_12] : memref<1x256xf32, #tpu.memory_space<vmem>>, vector<1x256xf32>
    %18 = vector.broadcast %17 : vector<1x256xf32> to vector<16x256xf32>
    %19 = arith.addf %16, %18 : vector<16x256xf32>
    %cst_13 = arith.constant 0.000000e+00 : f32
    %20 = vector.broadcast %cst_13 : f32 to vector<16x256xf32>
    %21 = arith.maximumf %19, %20 : vector<16x256xf32>
    %22 = arith.truncf %21 : vector<16x256xf32> to vector<16x256xbf16>
    %c0_14 = arith.constant 0 : index
    %c0_15 = arith.constant 0 : index
    %23 = vector.load %arg6[%c0_14, %c0_15] : memref<16x256xbf16, #tpu.memory_space<vmem>>, vector<16x256xbf16>
    tpu.vector_store %arg6[%c0_14, %c0_15], %22 {strides = array<i32>} : memref<16x256xbf16, #tpu.memory_space<vmem>>, vector<16x256xbf16>,
    %c0_16 = arith.constant 0 : index
    %c0_17 = arith.constant 0 : index
    %24 = vector.load %arg7[%c0_16, %c0_17] : memref<16x128xf32, #tpu.memory_space<vmem>>, vector<16x128xf32>
    tpu.vector_store %arg7[%c0_16, %c0_17], %5 {strides = array<i32>} : memref<16x128xf32, #tpu.memory_space<vmem>>, vector<16x128xf32>,
    return
  }
}

module attributes {stable_mosaic.version = 11 : i64} {
  func.func @_decode_kernel(%arg0: i32, %arg1: memref<16x256xbf16, #tpu.memory_space<vmem>>, %arg2: memref<768x256xbf16, #tpu.memory_space<vmem>>, %arg3: memref<1x768xf32, #tpu.memory_space<vmem>>, %arg4: memref<16x768xf32, #tpu.memory_space<vmem>>) attributes {dimension_semantics = [#tpu.dimension_semantics<parallel>], iteration_bounds = array<i64: 1>, scalar_prefetch = 0 : i64, scratch_operands = 0 : i64, tpu.core_type = #tpu.core_type<tc>, window_params = [{pipeline_mode = #tpu.pipeline_mode<synchronous>, transform_indices = @transform_0, window_bounds = array<i64: 16, 256>}, {transform_indices = @transform_1, window_bounds = array<i64: 768, 256>}, {transform_indices = @transform_2, window_bounds = array<i64: 1, 768>}, {transform_indices = @transform_3, window_bounds = array<i64: 16, 768>}]} {
    %c0 = arith.constant 0 : index
    %c0_0 = arith.constant 0 : index
    %0 = vector.load %arg1[%c0, %c0_0] : memref<16x256xbf16, #tpu.memory_space<vmem>>, vector<16x256xbf16>
    %c0_1 = arith.constant 0 : index
    %c0_2 = arith.constant 0 : index
    %1 = vector.load %arg2[%c0_1, %c0_2] : memref<768x256xbf16, #tpu.memory_space<vmem>>, vector<768x256xbf16>
    %cst = arith.constant dense<0.000000e+00> : vector<16x768xf32>
    %2 = tpu.matmul %0, %1, %cst {dimension_numbers = #tpu.dot_dimension_numbers<[1], [1], [0], [0], [0, 0, 1, 0], [], []>} : vector<16x256xbf16>, vector<768x256xbf16>, vector<16x768xf32> -> vector<16x768xf32>
    %c0_3 = arith.constant 0 : index
    %c0_4 = arith.constant 0 : index
    %3 = vector.load %arg3[%c0_3, %c0_4] : memref<1x768xf32, #tpu.memory_space<vmem>>, vector<1x768xf32>
    %4 = vector.broadcast %3 : vector<1x768xf32> to vector<16x768xf32>
    %5 = arith.addf %2, %4 : vector<16x768xf32>
    %cst_5 = arith.constant 0.000000e+00 : f32
    %6 = vector.broadcast %cst_5 : f32 to vector<16x768xf32>
    %7 = arith.subf %6, %5 : vector<16x768xf32>
    %8 = math.exp %7 : vector<16x768xf32>
    %cst_6 = arith.constant 1.000000e+00 : f32
    %9 = vector.broadcast %cst_6 : f32 to vector<16x768xf32>
    %10 = arith.addf %9, %8 : vector<16x768xf32>
    %cst_7 = arith.constant 1.000000e+00 : f32
    %11 = vector.broadcast %cst_7 : f32 to vector<16x768xf32>
    %12 = arith.divf %11, %10 : vector<16x768xf32>
    %c0_8 = arith.constant 0 : index
    %c0_9 = arith.constant 0 : index
    %13 = vector.load %arg4[%c0_8, %c0_9] : memref<16x768xf32, #tpu.memory_space<vmem>>, vector<16x768xf32>
    tpu.vector_store %arg4[%c0_8, %c0_9], %12 {strides = array<i32>} : memref<16x768xf32, #tpu.memory_space<vmem>>, vector<16x768xf32>,
    return
  }
  func.func @transform_0(%arg0: i32) -> (i32, i32) {
    %c0_i32 = arith.constant 0 : i32
    %c0_i32_0 = arith.constant 0 : i32
    %c0_i32_1 = arith.constant 0 : i32
    return %c0_i32, %c0_i32_0 : i32, i32
  }
  func.func @transform_1(%arg0: i32) -> (i32, i32) {
    %c0_i32 = arith.constant 0 : i32
    %c0_i32_0 = arith.constant 0 : i32
    return %arg0, %c0_i32 : i32, i32
  }
  func.func @transform_2(%arg0: i32) -> (i32, i32) {
    %c0_i32 = arith.constant 0 : i32
    %c0_i32_0 = arith.constant 0 : i32
    return %c0_i32, %arg0 : i32, i32
  }
  func.func @transform_3(%arg0: i32) -> (i32, i32) {
    %c0_i32 = arith.constant 0 : i32
    %c0_i32_0 = arith.constant 0 : i32
    return %c0_i32, %arg0 : i32, i32
  }
}

</mosaic_0001>

<bundles_post_ra>
// kernel: vae_forward.4
= control target key start
LH: loop header
LB: loop body
LE: loop exit
PB: predicated region body
PF: predicated region fallthrough
CT: control target
= control target key end

     0   :  { %v461_v39 = vmov 0   ;;  %vm295_vm0 = vcmask 523264   ;;  %v245_v51 = vlaneseq  ;;  %s605_s2 = inlined_call_operand.vmem [shape: bf16[256,128], index: 2, kind: input, shape index: {}]   ;;  %s606_s0 = inlined_call_operand.vmem [shape: bf16[16,256], index: 0, kind: input, shape index: {}]   ;;  %s607_s4 = inlined_call_operand.vmem [shape: bf16[64,256], index: 4, kind: input, shape index: {}]   ;;  %s608_s3 = inlined_call_operand.vmem [shape: f32[1,128], index: 3, kind: input, shape index: {}]   ;;  %s609_s7 = inlined_call_operand.vmem [shape: f32[16,128], index: 7, kind: output, shape index: {1}]   ;;  %s610_s1 = inlined_call_operand.vmem [shape: f32[16,64], index: 1, kind: input, shape index: {}]   ;;  %s611_s5 = inlined_call_operand.vmem [shape: f32[1,256], index: 5, kind: input, shape index: {}]   ;;  %s612_s6 = inlined_call_operand.vmem [shape: bf16[16,256], index: 6, kind: output, shape index: {0}]  }
   0x1   :  { %v426_v0 = vld [vmem:[%s605_s2 + $0x40] sm:$0xff]   ;;  %v428_v2 = vld [vmem:[%s605_s2 + $0x48] sm:$0xff]   ;;  %v430_v4 = vld [vmem:[%s605_s2 + $0x50] sm:$0xff]   ;;  %331 = vmatprep.mubr.bf16.mxu1 %v461_v39 }
   0x2   :  { %v427_v1 = vld [vmem:[%s605_s2] sm:$0xff]   ;;  %402 = vmatprep.subr.bf16.mxu0 %v426_v0  ;;  %v429_v3 = vld [vmem:[%s605_s2 + $0x8] sm:$0xff]   ;;  %v431_v5 = vld [vmem:[%s605_s2 + $0x10] sm:$0xff]   ;;  %v246_v52 = vshrl.u32 %v245_v51, 7 }
   0x3   :  { %403 = vmatpush3.bf16.msra.mxu0 %v427_v1  ;;  %v432_v6 = vld [vmem:[%s605_s2 + $0x58] sm:$0xff]   ;;  %v434_v8 = vld [vmem:[%s605_s2 + $0x60] sm:$0xff]   ;;  %v436_v10 = vld [vmem:[%s605_s2 + $0x68] sm:$0xff]  }
   0x4   :  { %404 = vmatprep.subr.bf16.mxu0 %v428_v2  ;;  %v433_v7 = vld [vmem:[%s605_s2 + $0x18] sm:$0xff]   ;;  %v435_v9 = vld [vmem:[%s605_s2 + $0x20] sm:$0xff]   ;;  %v437_v12 = vld [vmem:[%s605_s2 + $0x28] sm:$0xff]   ;;  %v247_v53 = vsub.s32 0, %v246_v52  ;;  %v251_v55 = vsub.s32 1, %v246_v52 }
   0x5   :  { %v444_v11 = vld [vmem:[%s606_s0 + $0x4] ss:$8 sps:$4 sm:$0xff]   ;;  %v438_v13 = vld [vmem:[%s605_s2 + $0x70] sm:$0xff]   ;;  %v440_v15 = vld [vmem:[%s605_s2 + $0x78] sm:$0xff]  }
   0x6   :  { %205 = vmatprep.mubr.bf16.mxu0 %v444_v11  ;;  %v439_v14 = vld [vmem:[%s605_s2 + $0x30] sm:$0xff]   ;;  %v441_v16 = vld [vmem:[%s605_s2 + $0x38] sm:$0xff]   ;;  %v442_v17 = vld [vmem:[%s606_s0] ss:$8 sps:$4 sm:$0xff]  }
   0x7   :  { %405 = vmatpush3.bf16.msra.mxu0 %v429_v3  ;;  %v445_v18 = vld [vmem:[%s607_s4 + $0x4] ss:$8 sps:$4 sm:$0xff]   ;;  %v447_v19 = vld [vmem:[%s607_s4] ss:$8 sps:$4 sm:$0xff]   ;;  %v448_v20 = vld [vmem:[%s607_s4 + $0x14] ss:$8 sps:$4 sm:$0xff]  }
   0x8   :  { %406 = vmatprep.subr.bf16.mxu0 %v430_v4  ;;  %299 = vmatprep.subr.bf16.mxu1 %v445_v18  ;;  %v450_v21 = vld [vmem:[%s607_s4 + $0x10] ss:$8 sps:$4 sm:$0xff]   ;;  %v370_v23 = vld [vmem:[%s608_s3] ss:$0 sm:$0xff]  ;;  %v451_v34 = vld [vmem:[%s607_s4 + $0x24] ss:$8 sps:$4 sm:$0xff]  }
   0x9   :  { %300 = vmatpush1.bf16.msra.mxu1 %v447_v19  ;;  %v453_v35 = vld [vmem:[%s607_s4 + $0x20] ss:$8 sps:$4 sm:$0xff]   ;;  %v454_v37 = vld [vmem:[%s607_s4 + $0x34] ss:$8 sps:$4 sm:$0xff]   ;;  %v456_v38 = vld [vmem:[%s607_s4 + $0x30] ss:$8 sps:$4 sm:$0xff]  }
   0xa   :  { %301 = vmatprep.subr.bf16.mxu1 %v448_v20  ;;  %v214_v42 = vld [vmem:[%s610_s1] sm:$0xff]  ;;  %v215_v44 = vld [vmem:[%s610_s1 + $0x8] sm:$0xff] }
   0xb   :  { %407 = vmatpush3.bf16.msra.mxu0 %v431_v5  ;;  %v243_v54 = vld [vmem:[%s611_s5] sm:$0x3] }
   0xc   :  { %408 = vmatprep.subr.bf16.mxu0 %v432_v6  ;;  %v248_v56 = vrot.slane %v243_v54, %v247_v53  ;;  %v252_v57 = vrot.slane %v243_v54, %v251_v55 }
   0xd   :  { %302 = vmatpush1.bf16.msra.mxu1 %v450_v21 }
   0xe   :  { %303 = vmatprep.subr.bf16.mxu1 %v451_v34 }
   0xf   :  { %409 = vmatpush3.bf16.msra.mxu0 %v433_v7 }
  0x10   :  { %410 = vmatprep.subr.bf16.mxu0 %v434_v8 }
  0x11   :  { %304 = vmatpush1.bf16.msra.mxu1 %v453_v35 }
  0x12   :  { %305 = vmatprep.subr.bf16.mxu1 %v454_v37 }
  0x13   :  { %411 = vmatpush3.bf16.msra.mxu0 %v435_v9 }
  0x14   :  { %412 = vmatprep.subr.bf16.mxu0 %v436_v10 }
  0x15   :  { %306 = vmatpush1.bf16.msra.mxu1 %v456_v38 }
  0x17   :  { %413 = vmatpush3.bf16.msra.mxu0 %v437_v12 }
  0x18   :  { %414 = vmatprep.subr.bf16.mxu0 %v438_v13 }
  0x1b   :  { %415 = vmatpush3.bf16.msra.mxu0 %v439_v14 }
  0x1c   :  { %416 = vmatprep.subr.bf16.mxu0 %v440_v15 }
  0x1f   :  { %417 = vmatpush3.bf16.msra.mxu0 %v441_v16 }
  0x22   :  { %206 = vmatmul.mubr.bf16.vlgmr.msra.gmra.mrb[0].mxu0 %v442_v17 }
  0xf5   :  { %v418_v22 = vpop.f32.mrb[0].mxu0 }
  0xf6   :  { %v419_v24 = vpop.f32.mrb[1].mxu0 }
  0xf7   :  { %v420_v25 = vadd.f32 %v419_v24, %v418_v22  ;;  %v421_v26 = vpop.f32.mrb[2].mxu0 }
  0xf8   :  { %v422_v27 = vpop.f32.mrb[3].mxu0 }
  0xf9   :  { %v208_v28 = vadd.f32 %v420_v25, %v370_v23  ;;  %v423_v29 = vadd.f32 %v422_v27, %v421_v26 }
  0xfb   :  { %v216_v30 = vmul.f32 0.5, %v208_v28  ;;  %360 = vst [vmem:[%s609_s7] sm:$0xff] %v208_v28  ;;  %v211_v31 = vadd.f32 %v423_v29, %v370_v23 }
  0xfd   :  { %v218_v32 = vmul.f32 1.442695, %v216_v30  ;;  %v217_v33 = vmul.f32 0.5, %v211_v31  ;;  %361 = vst [vmem:[%s609_s7 + $0x8] sm:$0xff] %v211_v31  ;;  %s462_s7 = smov 64  }
  0xff   :  { %457 = vpow2.f32 %v218_v32  ;;  %v220_v36 = vmul.f32 1.442695, %v217_v33 }
 0x101   :  { %459 = vpow2.f32 %v220_v36 }
 0x109   :  { %v458_v40 = vpop.eup %457 }
 0x10a   :  { %224 = vrot.lane.b32.xlu0 %v458_v40, %s462_s7 }
 0x10b   :  { %v460_v41 = vpop.eup %459 }
 0x10e   :  { %226 = vrot.lane.b32.xlu0 %v460_v41, %s462_s7 }
 0x17c   :  { %v225_v43 = vpop.permute.xlu0 %224 }
 0x17d   :  { %v230_v45 = vmul.f32 %v225_v43, %v214_v42 }
 0x17f   :  { %v232_v48 = vadd.f32 %v230_v45, %v208_v28 }
 0x180   :  { %v227_v46 = vpop.permute.xlu0 %226 }
 0x181   :  { %v231_v47 = vmul.f32 %v227_v46, %v215_v44 }
 0x183   :  { %v233_v49 = vadd.f32 %v231_v47, %v211_v31 }
 0x185   :  { %v234_v50 = vpack.c.bf16 %v233_v49, %v232_v48 }
 0x187   :  { %397 = vmatmul.mubr.msk.bf16.vlgmr.msra.gmra.mrb[0].mxu1 %vm295_vm0, %v234_v50 }
 0x25a   :  { %v333_v58 = vpop.f32.mrb[0].mxu1 }
 0x25b   :  { %v334_v59 = vadd.f32 %v333_v58, %v248_v56  ;;  %v335_v60 = vpop.f32.mrb[1].mxu1 }
 0x25c   :  { %v336_v61 = vadd.f32 %v335_v60, %v252_v57  ;;  %v337_v62 = vpop.f32.mrb[2].mxu1 }
 0x25d   :  { %v342_v63 = vmax.f32 %v334_v59, 0.0  ;;  %v338_v0 = vadd.f32 %v337_v62, %v248_v56  ;;  %v339_v1 = vpop.f32.mrb[3].mxu1 }
 0x25e   :  { %v343_v2 = vmax.f32 %v336_v61, 0.0  ;;  %v340_v3 = vadd.f32 %v339_v1, %v252_v57 }
 0x25f   :  { %v344_v4 = vmax.f32 %v338_v0, 0.0 }
 0x260   :  { %v400_v5 = vpack.c.bf16 %v343_v2, %v342_v63  ;;  %v345_v6 = vmax.f32 %v340_v3, 0.0 }
 0x262   :  { %358 = vst [vmem:[%s612_s6] sm:$0xff] %v400_v5  ;;  %v401_v7 = vpack.c.bf16 %v345_v6, %v344_v4 }
 0x264   :  { %359 = vst [vmem:[%s612_s6 + $0x8] sm:$0xff] %v401_v7 }

// kernel: vae_forward.3
= control target key start
LH: loop header
LB: loop body
LE: loop exit
PB: predicated region body
PF: predicated region fallthrough
CT: control target
= control target key end

     0   :  { %s1666_s12 = smov 0   ;;  %s1668_s13 = smov 0   ;;  %s2011_s0 = inlined_call_operand.vmem [shape: bf16[16,768], index: 0, kind: input, shape index: {}]   ;;  %s2012_s1 = inlined_call_operand.vmem [shape: bf16[768,256], index: 1, kind: input, shape index: {}]   ;;  %s2013_s2 = inlined_call_operand.vmem [shape: f32[1,256], index: 2, kind: input, shape index: {}]   ;;  %s2014_s3 = inlined_call_operand.vmem [shape: bf16[16,256], index: 3, kind: output, shape index: {}]  }
   0x1   :  { %s1670_s14 = smov 0   ;;  %s1672_s15 = smov 0  }
   0x2   :  { %s1674_s16 = smov 0  }
   0x3 LB: > { %s25_s17 = sadd.s32 1, %s1640_s15  ;;  %s1365_s18 = sadd.s32 4294967295, %s1644_s16   ;;  %s1644_s16 = sphi %s1674_s16, %s13_s16   ;;  %s1640_s15 = sphi %s1672_s15, %s2019_s15   ;;  %s1636_s14 = sphi %s1670_s14, %s2018_s14   ;;  %s1632_s13 = sphi %s1668_s13, %s2017_s13   ;;  %s1628_s12 = sphi %s1666_s12, %s2016_s12  }
   0x4   : > { %p27_p0 = scmp.ge.s32.totalorder %s25_s17, 2  ;;  %p67_p1 = scmp.ne.s32.totalorder %s1632_s13, %s1628_s12 }
   0x5   : > { %p68_p2 = scmp.eq.s32.totalorder %s1644_s16, 0  ;;  %p123_p4 = scmp.eq.s32.totalorder %s1365_s18, 1 }
   0x6   : > { %s2021_s17 = smov (%p27_p0, %s25_s17), 0  ;;  %s60_s20 = sadd.s32 1, %s1632_s13 }
   0x7   : > { %p69_p3 = por %p68_p2, %p67_p1  ;;  %s56_s19 = ssub.s32 %s1640_s15, %s2021_s17 }
   0x8   : > { %p58_p5 = scmp.eq.s32.totalorder %s56_s19, 0  ;;  %p1701_p6 = por %p123_p4, %p67_p1 }
   0x9   : > { %p1369_p7 = scmp.ge.s32.totalorder %s1644_s16, 2 }
   0xa   : > { %s1706_s22 = scalar_select %p58_p5, %s1632_s13, %s60_s20  }
   0xb   : > { %154 = sbr.rel (%p1369_p7) target bundleno = 86 (0x56), region = 20 }
  0x12   : > { %157 = sbr.rel (!%p69_p3) target bundleno = 86 (0x56), region = 24  ;;  %s159_s23 = sand.u32 (%p69_p3), 1, %s1632_s13  }
  0x13   : > { %s1370_s24 = sshll.u32 (%p69_p3), %s1640_s15, 2  ;;  %s1507_s25 = smul.u32 (%p69_p3), 384, %s159_s23 }
  0x14   : > { %s1714_s28 = scalar_lea.vmem (%p69_p3), %s2012_s1, %s1370_s24 }
  0x15   : > { %v182_v0 = vld [vmem:[%s1714_s28] sm:$0xf] (%p69_p3)  ;;  %v184_v1 = vld [vmem:[%s1714_s28 + $0x8] sm:$0xf] (%p69_p3)  ;;  %v186_v2 = vld [vmem:[%s1714_s28 + $0x10] sm:$0xf] (%p69_p3) }
  0x16   : > { %v188_v3 = vld [vmem:[%s1714_s28 + $0x18] sm:$0xf] (%p69_p3)  ;;  %v190_v4 = vld [vmem:[%s1714_s28 + $0x20] sm:$0xf] (%p69_p3)  ;;  %s1721_s29 = scalar_lea.vmem (%p69_p3), [#allocation3], %s1507_s25 }
  0x17   : > { %183 = vst [vmem:[%s1721_s29] sm:$0xf] (%p69_p3), %v182_v0  ;;  %185 = vst [vmem:[%s1721_s29 + $0x4] sm:$0xf] (%p69_p3), %v184_v1  ;;  %v192_v5 = vld [vmem:[%s1714_s28 + $0x28] sm:$0xf] (%p69_p3) }
  0x18   : > { %187 = vst [vmem:[%s1721_s29 + $0x8] sm:$0xf] (%p69_p3), %v186_v2  ;;  %189 = vst [vmem:[%s1721_s29 + $0xc] sm:$0xf] (%p69_p3), %v188_v3  ;;  %v194_v6 = vld [vmem:[%s1714_s28 + $0x30] sm:$0xf] (%p69_p3) }
  0x19   : > { %191 = vst [vmem:[%s1721_s29 + $0x10] sm:$0xf] %v190_v4  ;;  %v196_v7 = vld [vmem:[%s1714_s28 + $0x38] sm:$0xf]  ;;  %193 = vst [vmem:[%s1721_s29 + $0x14] sm:$0xf] %v192_v5 }
  0x1a   : > { %195 = vst [vmem:[%s1721_s29 + $0x18] sm:$0xf] %v194_v6  ;;  %197 = vst [vmem:[%s1721_s29 + $0x1c] sm:$0xf] %v196_v7  ;;  %v198_v8 = vld [vmem:[%s1714_s28 + $0x40] sm:$0xf] }
  0x1b   : > { %v200_v9 = vld [vmem:[%s1714_s28 + $0x48] sm:$0xf]  ;;  %v202_v10 = vld [vmem:[%s1714_s28 + $0x50] sm:$0xf]  ;;  %199 = vst [vmem:[%s1721_s29 + $0x20] sm:$0xf] %v198_v8 }
  0x1c   : > { %201 = vst [vmem:[%s1721_s29 + $0x24] sm:$0xf] %v200_v9  ;;  %203 = vst [vmem:[%s1721_s29 + $0x28] sm:$0xf] %v202_v10  ;;  %v204_v11 = vld [vmem:[%s1714_s28 + $0x58] sm:$0xf] }
  0x1d   : > { %v206_v12 = vld [vmem:[%s1714_s28 + $0x60] sm:$0xf]  ;;  %v208_v13 = vld [vmem:[%s1714_s28 + $0x68] sm:$0xf]  ;;  %205 = vst [vmem:[%s1721_s29 + $0x2c] sm:$0xf] %v204_v11 }
  0x1e   : > { %207 = vst [vmem:[%s1721_s29 + $0x30] sm:$0xf] %v206_v12  ;;  %209 = vst [vmem:[%s1721_s29 + $0x34] sm:$0xf] %v208_v13  ;;  %v210_v14 = vld [vmem:[%s1714_s28 + $0x70] sm:$0xf] }
  0x1f   : > { %v212_v15 = vld [vmem:[%s1714_s28 + $0x78] sm:$0xf]  ;;  %v214_v16 = vld [vmem:[%s1714_s28 + $0x80] sm:$0xf]  ;;  %211 = vst [vmem:[%s1721_s29 + $0x38] sm:$0xf] %v210_v14 }
  0x20   : > { %213 = vst [vmem:[%s1721_s29 + $0x3c] sm:$0xf] %v212_v15  ;;  %215 = vst [vmem:[%s1721_s29 + $0x40] sm:$0xf] %v214_v16  ;;  %v216_v17 = vld [vmem:[%s1714_s28 + $0x88] sm:$0xf] }
  0x21   : > { %v218_v18 = vld [vmem:[%s1714_s28 + $0x90] sm:$0xf]  ;;  %v220_v19 = vld [vmem:[%s1714_s28 + $0x98] sm:$0xf]  ;;  %217 = vst [vmem:[%s1721_s29 + $0x44] sm:$0xf] %v216_v17 }
  0x22   : > { %219 = vst [vmem:[%s1721_s29 + $0x48] sm:$0xf] %v218_v18  ;;  %221 = vst [vmem:[%s1721_s29 + $0x4c] sm:$0xf] %v220_v19  ;;  %v222_v20 = vld [vmem:[%s1714_s28 + $0xa0] sm:$0xf] }
  0x23   : > { %v224_v21 = vld [vmem:[%s1714_s28 + $0xa8] sm:$0xf]  ;;  %v226_v22 = vld [vmem:[%s1714_s28 + $0xb0] sm:$0xf]  ;;  %223 = vst [vmem:[%s1721_s29 + $0x50] sm:$0xf] %v222_v20 }
  0x24   : > { %225 = vst [vmem:[%s1721_s29 + $0x54] sm:$0xf] %v224_v21  ;;  %227 = vst [vmem:[%s1721_s29 + $0x58] sm:$0xf] %v226_v22  ;;  %v228_v23 = vld [vmem:[%s1714_s28 + $0xb8] sm:$0xf] }
  0x25   : > { %v230_v24 = vld [vmem:[%s1714_s28 + $0xc0] sm:$0xf]  ;;  %v232_v25 = vld [vmem:[%s1714_s28 + $0xc8] sm:$0xf]  ;;  %229 = vst [vmem:[%s1721_s29 + $0x5c] sm:$0xf] %v228_v23 }
  0x26   : > { %231 = vst [vmem:[%s1721_s29 + $0x60] sm:$0xf] %v230_v24  ;;  %233 = vst [vmem:[%s1721_s29 + $0x64] sm:$0xf] %v232_v25  ;;  %v234_v26 = vld [vmem:[%s1714_s28 + $0xd0] sm:$0xf] }
  0x27   : > { %v236_v27 = vld [vmem:[%s1714_s28 + $0xd8] sm:$0xf]  ;;  %v238_v28 = vld [vmem:[%s1714_s28 + $0xe0] sm:$0xf]  ;;  %235 = vst [vmem:[%s1721_s29 + $0x68] sm:$0xf] %v234_v26 }
  0x28   : > { %237 = vst [vmem:[%s1721_s29 + $0x6c] sm:$0xf] %v236_v27  ;;  %239 = vst [vmem:[%s1721_s29 + $0x70] sm:$0xf] %v238_v28  ;;  %v240_v29 = vld [vmem:[%s1714_s28 + $0xe8] sm:$0xf] }
  0x29   : > { %v242_v30 = vld [vmem:[%s1714_s28 + $0xf0] sm:$0xf]  ;;  %v244_v31 = vld [vmem:[%s1714_s28 + $0xf8] sm:$0xf]  ;;  %241 = vst [vmem:[%s1721_s29 + $0x74] sm:$0xf] %v240_v29 }
  0x2a   : > { %243 = vst [vmem:[%s1721_s29 + $0x78] sm:$0xf] %v242_v30  ;;  %245 = vst [vmem:[%s1721_s29 + $0x7c] sm:$0xf] %v244_v31  ;;  %v246_v32 = vld [vmem:[%s1714_s28 + $0x100] sm:$0xf] }
  0x2b   : > { %v248_v33 = vld [vmem:[%s1714_s28 + $0x108] sm:$0xf]  ;;  %v250_v34 = vld [vmem:[%s1714_s28 + $0x110] sm:$0xf]  ;;  %247 = vst [vmem:[%s1721_s29 + $0x80] sm:$0xf] %v246_v32 }
  0x2c   : > { %249 = vst [vmem:[%s1721_s29 + $0x84] sm:$0xf] %v248_v33  ;;  %251 = vst [vmem:[%s1721_s29 + $0x88] sm:$0xf] %v250_v34  ;;  %v252_v35 = vld [vmem:[%s1714_s28 + $0x118] sm:$0xf] }
  0x2d   : > { %v254_v36 = vld [vmem:[%s1714_s28 + $0x120] sm:$0xf]  ;;  %v256_v37 = vld [vmem:[%s1714_s28 + $0x128] sm:$0xf]  ;;  %253 = vst [vmem:[%s1721_s29 + $0x8c] sm:$0xf] %v252_v35 }
  0x2e   : > { %255 = vst [vmem:[%s1721_s29 + $0x90] sm:$0xf] %v254_v36  ;;  %257 = vst [vmem:[%s1721_s29 + $0x94] sm:$0xf] %v256_v37  ;;  %v258_v38 = vld [vmem:[%s1714_s28 + $0x130] sm:$0xf] }
  0x2f   : > { %v260_v39 = vld [vmem:[%s1714_s28 + $0x138] sm:$0xf]  ;;  %v262_v40 = vld [vmem:[%s1714_s28 + $0x140] sm:$0xf]  ;;  %259 = vst [vmem:[%s1721_s29 + $0x98] sm:$0xf] %v258_v38 }
  0x30   : > { %261 = vst [vmem:[%s1721_s29 + $0x9c] sm:$0xf] %v260_v39  ;;  %263 = vst [vmem:[%s1721_s29 + $0xa0] sm:$0xf] %v262_v40  ;;  %v264_v41 = vld [vmem:[%s1714_s28 + $0x148] sm:$0xf] }
  0x31   : > { %v266_v42 = vld [vmem:[%s1714_s28 + $0x150] sm:$0xf]  ;;  %v268_v43 = vld [vmem:[%s1714_s28 + $0x158] sm:$0xf]  ;;  %265 = vst [vmem:[%s1721_s29 + $0xa4] sm:$0xf] %v264_v41 }
  0x32   : > { %267 = vst [vmem:[%s1721_s29 + $0xa8] sm:$0xf] %v266_v42  ;;  %269 = vst [vmem:[%s1721_s29 + $0xac] sm:$0xf] %v268_v43  ;;  %v270_v44 = vld [vmem:[%s1714_s28 + $0x160] sm:$0xf] }
  0x33   : > { %v272_v45 = vld [vmem:[%s1714_s28 + $0x168] sm:$0xf]  ;;  %v274_v46 = vld [vmem:[%s1714_s28 + $0x170] sm:$0xf]  ;;  %271 = vst [vmem:[%s1721_s29 + $0xb0] sm:$0xf] %v270_v44 }
  0x34   : > { %273 = vst [vmem:[%s1721_s29 + $0xb4] sm:$0xf] %v272_v45  ;;  %275 = vst [vmem:[%s1721_s29 + $0xb8] sm:$0xf] %v274_v46  ;;  %v276_v47 = vld [vmem:[%s1714_s28 + $0x178] sm:$0xf] }
  0x35   : > { %v278_v48 = vld [vmem:[%s1714_s28 + $0x180] sm:$0xf]  ;;  %v280_v49 = vld [vmem:[%s1714_s28 + $0x188] sm:$0xf]  ;;  %277 = vst [vmem:[%s1721_s29 + $0xbc] sm:$0xf] %v276_v47 }
  0x36   : > { %279 = vst [vmem:[%s1721_s29 + $0xc0] sm:$0xf] %v278_v48  ;;  %281 = vst [vmem:[%s1721_s29 + $0xc4] sm:$0xf] %v280_v49  ;;  %v282_v50 = vld [vmem:[%s1714_s28 + $0x190] sm:$0xf] }
  0x37   : > { %v284_v51 = vld [vmem:[%s1714_s28 + $0x198] sm:$0xf]  ;;  %v286_v52 = vld [vmem:[%s1714_s28 + $0x1a0] sm:$0xf]  ;;  %283 = vst [vmem:[%s1721_s29 + $0xc8] sm:$0xf] %v282_v50 }
  0x38   : > { %285 = vst [vmem:[%s1721_s29 + $0xcc] sm:$0xf] %v284_v51  ;;  %287 = vst [vmem:[%s1721_s29 + $0xd0] sm:$0xf] %v286_v52  ;;  %v288_v53 = vld [vmem:[%s1714_s28 + $0x1a8] sm:$0xf] }
  0x39   : > { %v290_v54 = vld [vmem:[%s1714_s28 + $0x1b0] sm:$0xf]  ;;  %v292_v55 = vld [vmem:[%s1714_s28 + $0x1b8] sm:$0xf]  ;;  %289 = vst [vmem:[%s1721_s29 + $0xd4] sm:$0xf] %v288_v53 }
  0x3a   : > { %291 = vst [vmem:[%s1721_s29 + $0xd8] sm:$0xf] %v290_v54  ;;  %293 = vst [vmem:[%s1721_s29 + $0xdc] sm:$0xf] %v292_v55  ;;  %v294_v56 = vld [vmem:[%s1714_s28 + $0x1c0] sm:$0xf] }
  0x3b   : > { %v296_v57 = vld [vmem:[%s1714_s28 + $0x1c8] sm:$0xf]  ;;  %v298_v58 = vld [vmem:[%s1714_s28 + $0x1d0] sm:$0xf]  ;;  %295 = vst [vmem:[%s1721_s29 + $0xe0] sm:$0xf] %v294_v56 }
  0x3c   : > { %297 = vst [vmem:[%s1721_s29 + $0xe4] sm:$0xf] %v296_v57  ;;  %299 = vst [vmem:[%s1721_s29 + $0xe8] sm:$0xf] %v298_v58  ;;  %v300_v59 = vld [vmem:[%s1714_s28 + $0x1d8] sm:$0xf] }
  0x3d   : > { %v302_v60 = vld [vmem:[%s1714_s28 + $0x1e0] sm:$0xf]  ;;  %v304_v61 = vld [vmem:[%s1714_s28 + $0x1e8] sm:$0xf]  ;;  %301 = vst [vmem:[%s1721_s29 + $0xec] sm:$0xf] %v300_v59 }
  0x3e   : > { %303 = vst [vmem:[%s1721_s29 + $0xf0] sm:$0xf] %v302_v60  ;;  %305 = vst [vmem:[%s1721_s29 + $0xf4] sm:$0xf] %v304_v61  ;;  %v306_v62 = vld [vmem:[%s1714_s28 + $0x1f0] sm:$0xf] }
  0x3f   : > { %v308_v63 = vld [vmem:[%s1714_s28 + $0x1f8] sm:$0xf]  ;;  %v310_v0 = vld [vmem:[%s1714_s28 + $0x200] sm:$0xf]  ;;  %307 = vst [vmem:[%s1721_s29 + $0xf8] sm:$0xf] %v306_v62 }
  0x40   : > { %309 = vst [vmem:[%s1721_s29 + $0xfc] sm:$0xf] %v308_v63  ;;  %311 = vst [vmem:[%s1721_s29 + $0x100] sm:$0xf] %v310_v0  ;;  %v312_v1 = vld [vmem:[%s1714_s28 + $0x208] sm:$0xf] }
  0x41   : > { %v314_v2 = vld [vmem:[%s1714_s28 + $0x210] sm:$0xf]  ;;  %v316_v3 = vld [vmem:[%s1714_s28 + $0x218] sm:$0xf]  ;;  %313 = vst [vmem:[%s1721_s29 + $0x104] sm:$0xf] %v312_v1 }
  0x42   : > { %315 = vst [vmem:[%s1721_s29 + $0x108] sm:$0xf] %v314_v2  ;;  %317 = vst [vmem:[%s1721_s29 + $0x10c] sm:$0xf] %v316_v3  ;;  %v318_v4 = vld [vmem:[%s1714_s28 + $0x220] sm:$0xf] }
  0x43   : > { %v320_v5 = vld [vmem:[%s1714_s28 + $0x228] sm:$0xf]  ;;  %v322_v6 = vld [vmem:[%s1714_s28 + $0x230] sm:$0xf]  ;;  %319 = vst [vmem:[%s1721_s29 + $0x110] sm:$0xf] %v318_v4 }
  0x44   : > { %321 = vst [vmem:[%s1721_s29 + $0x114] sm:$0xf] %v320_v5  ;;  %323 = vst [vmem:[%s1721_s29 + $0x118] sm:$0xf] %v322_v6  ;;  %v324_v7 = vld [vmem:[%s1714_s28 + $0x238] sm:$0xf] }
  0x45   : > { %v326_v8 = vld [vmem:[%s1714_s28 + $0x240] sm:$0xf]  ;;  %v328_v9 = vld [vmem:[%s1714_s28 + $0x248] sm:$0xf]  ;;  %325 = vst [vmem:[%s1721_s29 + $0x11c] sm:$0xf] %v324_v7 }
  0x46   : > { %327 = vst [vmem:[%s1721_s29 + $0x120] sm:$0xf] %v326_v8  ;;  %329 = vst [vmem:[%s1721_s29 + $0x124] sm:$0xf] %v328_v9  ;;  %v330_v10 = vld [vmem:[%s1714_s28 + $0x250] sm:$0xf] }
  0x47   : > { %v332_v11 = vld [vmem:[%s1714_s28 + $0x258] sm:$0xf]  ;;  %v334_v12 = vld [vmem:[%s1714_s28 + $0x260] sm:$0xf]  ;;  %331 = vst [vmem:[%s1721_s29 + $0x128] sm:$0xf] %v330_v10 }
  0x48   : > { %333 = vst [vmem:[%s1721_s29 + $0x12c] sm:$0xf] %v332_v11  ;;  %335 = vst [vmem:[%s1721_s29 + $0x130] sm:$0xf] %v334_v12  ;;  %v336_v13 = vld [vmem:[%s1714_s28 + $0x268] sm:$0xf] }
  0x49   : > { %v338_v14 = vld [vmem:[%s1714_s28 + $0x270] sm:$0xf]  ;;  %v340_v15 = vld [vmem:[%s1714_s28 + $0x278] sm:$0xf]  ;;  %337 = vst [vmem:[%s1721_s29 + $0x134] sm:$0xf] %v336_v13 }
  0x4a   : > { %339 = vst [vmem:[%s1721_s29 + $0x138] sm:$0xf] %v338_v14  ;;  %341 = vst [vmem:[%s1721_s29 + $0x13c] sm:$0xf] %v340_v15  ;;  %v342_v16 = vld [vmem:[%s1714_s28 + $0x280] sm:$0xf] }
  0x4b   : > { %v344_v17 = vld [vmem:[%s1714_s28 + $0x288] sm:$0xf]  ;;  %v346_v18 = vld [vmem:[%s1714_s28 + $0x290] sm:$0xf]  ;;  %343 = vst [vmem:[%s1721_s29 + $0x140] sm:$0xf] %v342_v16 }
  0x4c   : > { %345 = vst [vmem:[%s1721_s29 + $0x144] sm:$0xf] %v344_v17  ;;  %347 = vst [vmem:[%s1721_s29 + $0x148] sm:$0xf] %v346_v18  ;;  %v348_v19 = vld [vmem:[%s1714_s28 + $0x298] sm:$0xf] }
  0x4d   : > { %v350_v20 = vld [vmem:[%s1714_s28 + $0x2a0] sm:$0xf]  ;;  %v352_v21 = vld [vmem:[%s1714_s28 + $0x2a8] sm:$0xf]  ;;  %349 = vst [vmem:[%s1721_s29 + $0x14c] sm:$0xf] %v348_v19 }
  0x4e   : > { %351 = vst [vmem:[%s1721_s29 + $0x150] sm:$0xf] %v350_v20  ;;  %353 = vst [vmem:[%s1721_s29 + $0x154] sm:$0xf] %v352_v21  ;;  %v354_v22 = vld [vmem:[%s1714_s28 + $0x2b0] sm:$0xf] }
  0x4f   : > { %v356_v23 = vld [vmem:[%s1714_s28 + $0x2b8] sm:$0xf]  ;;  %v358_v24 = vld [vmem:[%s1714_s28 + $0x2c0] sm:$0xf]  ;;  %355 = vst [vmem:[%s1721_s29 + $0x158] sm:$0xf] %v354_v22 }
  0x50   : > { %357 = vst [vmem:[%s1721_s29 + $0x15c] sm:$0xf] %v356_v23  ;;  %359 = vst [vmem:[%s1721_s29 + $0x160] sm:$0xf] %v358_v24  ;;  %v360_v25 = vld [vmem:[%s1714_s28 + $0x2c8] sm:$0xf] }
  0x51   : > { %v362_v26 = vld [vmem:[%s1714_s28 + $0x2d0] sm:$0xf]  ;;  %v364_v27 = vld [vmem:[%s1714_s28 + $0x2d8] sm:$0xf]  ;;  %361 = vst [vmem:[%s1721_s29 + $0x164] sm:$0xf] %v360_v25 }
  0x52   : > { %363 = vst [vmem:[%s1721_s29 + $0x168] sm:$0xf] %v362_v26  ;;  %365 = vst [vmem:[%s1721_s29 + $0x16c] sm:$0xf] %v364_v27  ;;  %v366_v28 = vld [vmem:[%s1714_s28 + $0x2e0] sm:$0xf] }
  0x53   : > { %v368_v29 = vld [vmem:[%s1714_s28 + $0x2e8] sm:$0xf]  ;;  %v370_v30 = vld [vmem:[%s1714_s28 + $0x2f0] sm:$0xf]  ;;  %367 = vst [vmem:[%s1721_s29 + $0x170] sm:$0xf] %v366_v28 }
  0x54   : > { %369 = vst [vmem:[%s1721_s29 + $0x174] sm:$0xf] %v368_v29  ;;  %371 = vst [vmem:[%s1721_s29 + $0x178] sm:$0xf] %v370_v30  ;;  %v372_v31 = vld [vmem:[%s1714_s28 + $0x2f8] sm:$0xf] }
  0x55   : > { %373 = vst [vmem:[%s1721_s29 + $0x17c] sm:$0xf] %v372_v31 }
  0x56 PF: > { %p1371_p8 = scmp.ge.s32.totalorder %s1644_s16, 1  ;;  %p593_p9 = scmp.lt.s32.totalorder %s1644_s16, 3 }
  0x58   : > { %p594_p10 = pnand %p1371_p8, %p593_p9 }
  0x59   : > { %s600_s30 = sand.u32 (!%p594_p10), 1, %s1628_s12   ;;  %v1583_v32 = vld [vmem:[%s2011_s0 + $0x4] ss:$24 sps:$4 sm:$0xff] (!%p594_p10)   ;;  %v1581_v0 = vld [vmem:[%s2011_s0] ss:$24 sps:$4 sm:$0xff] (!%p594_p10)   ;;  %p637_p11 = scmp.lt.s32.totalorder (!%p594_p10), %s1636_s14, 1 }
  0x5a   : > { %597 = sbr.rel (%p594_p10) target bundleno = 394 (0x18a), region = 69  ;;  %v1586_v33 = vld [vmem:[%s2011_s0 + $0xc] ss:$24 sps:$4 sm:$0xff] (!%p594_p10)   ;;  %1101 = vmatprep.mubr.bf16.mxu0 (!%p594_p10), %v1583_v32  ;;  %v1584_v2 = vld [vmem:[%s2011_s0 + $0x8] ss:$24 sps:$4 sm:$0xff] (!%p594_p10)  }
  0x5b   : > { %s1508_s4 = smul.u32 (!%p594_p10), 384, %s600_s30  ;;  %1142 = vmatprep.mubr.bf16.mxu1 (!%p594_p10), %v1586_v33  ;;  %v1605_v4 = vld [vmem:[%s2011_s0 + $0x14] ss:$24 sps:$4 sm:$0xff] (!%p594_p10)   ;;  %v1603_v21 = vld [vmem:[%s2011_s0 + $0x10] ss:$24 sps:$4 sm:$0xff] (!%p594_p10)  }
  0x5d   : > { %s1921_s9 = scalar_lea.vmem (!%p594_p10), [#allocation3], %s1508_s4  ;;  %s1372_s4 = sshll.u32 (!%p594_p10), %s600_s30, 3 }
  0x5e   : > { %v1549_v34 = vld [vmem:[%s1921_s9 + $0x40] sm:$0xff] (!%p594_p10)   ;;  %v1553_v38 = vld [vmem:[%s1921_s9 + $0x48] sm:$0xff] (!%p594_p10)   ;;  %v1557_v42 = vld [vmem:[%s1921_s9 + $0x50] sm:$0xff] (!%p594_p10)   ;;  %s629_s5 = scalar_lea.vmem (!%p594_p10), [#allocation4], %s1372_s4 }
  0x5f   : > { %v1550_v35 = vld [vmem:[%s1921_s9 + $0xc0] sm:$0xff] (!%p594_p10)   ;;  %1441 = vmatprep.subr.bf16.mxu0 (!%p594_p10), %v1549_v34  ;;  %v1554_v39 = vld [vmem:[%s1921_s9 + $0xc8] sm:$0xff] (!%p594_p10)   ;;  %v1558_v43 = vld [vmem:[%s1921_s9 + $0xd0] sm:$0xff] (!%p594_p10)  }
  0x60   : > { %v1551_v36 = vld [vmem:[%s1921_s9] sm:$0xff] (!%p594_p10)   ;;  %1463 = vmatprep.subr.bf16.mxu1 (!%p594_p10), %v1550_v35  ;;  %v1555_v40 = vld [vmem:[%s1921_s9 + $0x8] sm:$0xff] (!%p594_p10)   ;;  %v1559_v44 = vld [vmem:[%s1921_s9 + $0x10] sm:$0xff] (!%p594_p10)  }
  0x61   : > { %v1552_v37 = vld [vmem:[%s1921_s9 + $0x80] sm:$0xff]   ;;  %1442 = vmatpush3.bf16.msra.mxu0 %v1551_v36  ;;  %v1556_v41 = vld [vmem:[%s1921_s9 + $0x88] sm:$0xff]   ;;  %v1560_v45 = vld [vmem:[%s1921_s9 + $0x90] sm:$0xff]   ;;  %s638_s26 = scalar_select %p637_p11, %s1636_s14, 1 }
  0x62   : > { %1464 = vmatpush3.bf16.msra.mxu1 %v1552_v37  ;;  %1443 = vmatprep.subr.bf16.mxu0 %v1553_v38  ;;  %v1561_v46 = vld [vmem:[%s1921_s9 + $0x58] sm:$0xff]   ;;  %v1565_v50 = vld [vmem:[%s1921_s9 + $0x60] sm:$0xff]   ;;  %v1569_v54 = vld [vmem:[%s1921_s9 + $0x68] sm:$0xff]   ;;  %s1431_s6 = sshll.u32 (%p1701_p6), %s1636_s14, 2 }
  0x63   : > { %1465 = vmatprep.subr.bf16.mxu1 %v1554_v39  ;;  %v1562_v47 = vld [vmem:[%s1921_s9 + $0xd8] sm:$0xff]   ;;  %v1566_v51 = vld [vmem:[%s1921_s9 + $0xe0] sm:$0xff]   ;;  %v1570_v55 = vld [vmem:[%s1921_s9 + $0xe8] sm:$0xff]   ;;  %s639_s29 = scalar_lea.vmem %s2013_s2, %s638_s26 }
  0x64   : > { %v1563_v48 = vld [vmem:[%s1921_s9 + $0x18] sm:$0xff]   ;;  %v1567_v52 = vld [vmem:[%s1921_s9 + $0x20] sm:$0xff]   ;;  %v1571_v56 = vld [vmem:[%s1921_s9 + $0x28] sm:$0xff]  }
  0x65   : > { %1444 = vmatpush3.bf16.msra.mxu0 %v1555_v40  ;;  %v1564_v49 = vld [vmem:[%s1921_s9 + $0x98] sm:$0xff]   ;;  %v1568_v53 = vld [vmem:[%s1921_s9 + $0xa0] sm:$0xff]   ;;  %v1572_v57 = vld [vmem:[%s1921_s9 + $0xa8] sm:$0xff]  }
  0x66   : > { %1466 = vmatpush3.bf16.msra.mxu1 %v1556_v41  ;;  %1445 = vmatprep.subr.bf16.mxu0 %v1557_v42  ;;  %v1573_v58 = vld [vmem:[%s1921_s9 + $0x70] sm:$0xff]   ;;  %v1577_v62 = vld [vmem:[%s1921_s9 + $0x78] sm:$0xff]   ;;  %v1587_v5 = vld [vmem:[%s1921_s9 + $0x140] sm:$0xff]  }
  0x67   : > { %1467 = vmatprep.subr.bf16.mxu1 %v1558_v43  ;;  %v1574_v59 = vld [vmem:[%s1921_s9 + $0xf0] sm:$0xff]   ;;  %v1578_v63 = vld [vmem:[%s1921_s9 + $0xf8] sm:$0xff]   ;;  %v1588_v6 = vld [vmem:[%s1921_s9 + $0x100] sm:$0xff]  }
  0x68   : > { %v1575_v60 = vld [vmem:[%s1921_s9 + $0x30] sm:$0xff]   ;;  %v1579_v1 = vld [vmem:[%s1921_s9 + $0x38] sm:$0xff]   ;;  %v1589_v7 = vld [vmem:[%s1921_s9 + $0x148] sm:$0xff]  }
  0x69   : > { %1446 = vmatpush3.bf16.msra.mxu0 %v1559_v44  ;;  %v1576_v61 = vld [vmem:[%s1921_s9 + $0xb0] sm:$0xff]   ;;  %v1580_v3 = vld [vmem:[%s1921_s9 + $0xb8] sm:$0xff]   ;;  %v1590_v8 = vld [vmem:[%s1921_s9 + $0x108] sm:$0xff]  }
  0x6a   : > { %1468 = vmatpush3.bf16.msra.mxu1 %v1560_v45  ;;  %1447 = vmatprep.subr.bf16.mxu0 %v1561_v46  ;;  %v1591_v9 = vld [vmem:[%s1921_s9 + $0x150] sm:$0xff]   ;;  %v1593_v11 = vld [vmem:[%s1921_s9 + $0x158] sm:$0xff]   ;;  %v1595_v13 = vld [vmem:[%s1921_s9 + $0x160] sm:$0xff]  }
  0x6b   : > { %1469 = vmatprep.subr.bf16.mxu1 %v1562_v47  ;;  %v1592_v10 = vld [vmem:[%s1921_s9 + $0x110] sm:$0xff]   ;;  %v1594_v12 = vld [vmem:[%s1921_s9 + $0x118] sm:$0xff]   ;;  %v1596_v14 = vld [vmem:[%s1921_s9 + $0x120] sm:$0xff]  }
  0x6c   : > { %v1597_v15 = vld [vmem:[%s1921_s9 + $0x168] sm:$0xff]   ;;  %v1599_v17 = vld [vmem:[%s1921_s9 + $0x170] sm:$0xff]   ;;  %v1601_v19 = vld [vmem:[%s1921_s9 + $0x178] sm:$0xff]  }
  0x6d   : > { %1448 = vmatpush3.bf16.msra.mxu0 %v1563_v48  ;;  %v1598_v16 = vld [vmem:[%s1921_s9 + $0x128] sm:$0xff]   ;;  %v1600_v18 = vld [vmem:[%s1921_s9 + $0x130] sm:$0xff]   ;;  %v1602_v20 = vld [vmem:[%s1921_s9 + $0x138] sm:$0xff]   ;;  %s1230_s9 = scalar_lea.vmem (%p1701_p6), %s2014_s3, %s1431_s6 }
  0x6e   : > { %1470 = vmatpush3.bf16.msra.mxu1 %v1564_v49  ;;  %1449 = vmatprep.subr.bf16.mxu0 %v1565_v50  ;;  %v1427_v40 = vld [vmem:[%s639_s29] ss:$0 sm:$0xff] }
  0x6f   : > { %1471 = vmatprep.subr.bf16.mxu1 %v1566_v51 }
  0x71   : > { %1450 = vmatpush3.bf16.msra.mxu0 %v1567_v52 }
  0x72   : > { %1472 = vmatpush3.bf16.msra.mxu1 %v1568_v53  ;;  %1451 = vmatprep.subr.bf16.mxu0 %v1569_v54 }
  0x73   : > { %1473 = vmatprep.subr.bf16.mxu1 %v1570_v55 }
  0x75   : > { %1452 = vmatpush3.bf16.msra.mxu0 %v1571_v56 }
  0x76   : > { %1474 = vmatpush3.bf16.msra.mxu1 %v1572_v57  ;;  %1453 = vmatprep.subr.bf16.mxu0 %v1573_v58 }
  0x77   : > { %1475 = vmatprep.subr.bf16.mxu1 %v1574_v59 }
  0x79   : > { %1454 = vmatpush3.bf16.msra.mxu0 %v1575_v60 }
  0x7a   : > { %1476 = vmatpush3.bf16.msra.mxu1 %v1576_v61  ;;  %1455 = vmatprep.subr.bf16.mxu0 %v1577_v62 }
  0x7b   : > { %1477 = vmatprep.subr.bf16.mxu1 %v1578_v63 }
  0x7d   : > { %1456 = vmatpush3.bf16.msra.mxu0 %v1579_v1 }
  0x7e   : > { %1478 = vmatpush3.bf16.msra.mxu1 %v1580_v3  ;;  %1485 = vmatprep.subr.bf16.mxu0 %v1587_v5 }
  0x80   : > { %1102 = vmatmul.mubr.bf16.vlgmr.msra.gmra.mrb[0].mxu0 %v1581_v0 }
  0x81   : > { %1143 = vmatmul.mubr.bf16.vlgmr.msra.gmra.mrb[0].mxu1 %v1584_v2  ;;  %1486 = vmatpush3.bf16.msra.mxu0 %v1588_v6 }
  0x82   : > { %1487 = vmatprep.subr.bf16.mxu0 %v1589_v7  ;;  %1183 = vmatprep.mubr.bf16.mxu0 %v1605_v4 }
  0x85   : > { %1488 = vmatpush3.bf16.msra.mxu0 %v1590_v8 }
  0x86   : > { %1489 = vmatprep.subr.bf16.mxu0 %v1591_v9 }
  0x89   : > { %1490 = vmatpush3.bf16.msra.mxu0 %v1592_v10 }
  0x8a   : > { %1491 = vmatprep.subr.bf16.mxu0 %v1593_v11 }
  0x8d   : > { %1492 = vmatpush3.bf16.msra.mxu0 %v1594_v12 }
  0x8e   : > { %1493 = vmatprep.subr.bf16.mxu0 %v1595_v13 }
  0x91   : > { %1494 = vmatpush3.bf16.msra.mxu0 %v1596_v14 }
  0x92   : > { %1495 = vmatprep.subr.bf16.mxu0 %v1597_v15 }
  0x95   : > { %1496 = vmatpush3.bf16.msra.mxu0 %v1598_v16 }
  0x96   : > { %1497 = vmatprep.subr.bf16.mxu0 %v1599_v17 }
  0x99   : > { %1498 = vmatpush3.bf16.msra.mxu0 %v1600_v18 }
  0x9a   : > { %1499 = vmatprep.subr.bf16.mxu0 %v1601_v19 }
  0x9d   : > { %1500 = vmatpush3.bf16.msra.mxu0 %v1602_v20 }
  0xa0   : > { %1184 = vmatmul.mubr.bf16.vlgmr.msra.gmra.mrb[4].mxu0 %v1603_v21 }
 0x153   : > { %v1457_v22 = vpop.f32.mrb[0].mxu0 }
 0x154   : > { %v1479_v23 = vpop.f32.mrb[0].mxu1  ;;  %v1458_v24 = vpop.f32.mrb[1].mxu0 }
 0x155   : > { %v1459_v25 = vadd.f32 %v1458_v24, %v1457_v22  ;;  %v1480_v26 = vpop.f32.mrb[1].mxu1  ;;  %v1460_v27 = vpop.f32.mrb[2].mxu0 }
 0x156   : > { %v1481_v28 = vadd.f32 %v1480_v26, %v1479_v23  ;;  %v1482_v29 = vpop.f32.mrb[2].mxu1  ;;  %v1461_v30 = vpop.f32.mrb[3].mxu0 }
 0x157   : > { %v1462_v31 = vadd.f32 %v1461_v30, %v1460_v27  ;;  %v1483_v32 = vpop.f32.mrb[3].mxu1 }
 0x158   : > { %v1145_v33 = vadd.f32 %v1481_v28, %v1459_v25  ;;  %v1484_v34 = vadd.f32 %v1483_v32, %v1482_v29 }
 0x15a   : > { %v1148_v35 = vadd.f32 %v1484_v34, %v1462_v31 }
 0x173   : > { %v1501_v36 = vpop.f32.mrb[4].mxu0 }
 0x174   : > { %v1502_v37 = vpop.f32.mrb[5].mxu0 }
 0x175   : > { %v1503_v38 = vadd.f32 %v1502_v37, %v1501_v36  ;;  %v1504_v39 = vpop.f32.mrb[6].mxu0 }
 0x176   : > { %v1505_v41 = vpop.f32.mrb[7].mxu0 }
 0x177   : > { %v1186_v42 = vadd.f32 %v1503_v38, %v1145_v33  ;;  %v1506_v43 = vadd.f32 %v1505_v41, %v1504_v39 }
 0x179   : > { %v1208_v44 = vadd.f32 %v1427_v40, %v1186_v42  ;;  %v1189_v45 = vadd.f32 %v1506_v43, %v1148_v35 }
 0x17b   : > { %v1209_v46 = vadd.f32 %v1427_v40, %v1189_v45  ;;  %v1210_v47 = vmax.f32 %v1208_v44, 0.0  ;;  %1228 = sbr.rel (!%p1701_p6) target bundleno = 394 (0x18a), region = 85 }
 0x17d   : > { %v1211_v48 = vmax.f32 %v1209_v46, 0.0 }
 0x17f   : > { %v1439_v49 = vpack.c.bf16 %v1211_v48, %v1210_v47 }
 0x181   : > { %1440 = vst [vmem:[%s629_s5] sm:$0xff] %v1439_v49  }
 0x188   : > { %v1246_v50 = vld [vmem:[%s629_s5] sm:$0xf]  ;;  %v1248_v51 = vld [vmem:[%s629_s5 + $0x4] sm:$0xf] }
 0x189   : > { %1247 = vst [vmem:[%s1230_s9] sm:$0xf] %v1246_v50  ;;  %1249 = vst [vmem:[%s1230_s9 + $0x8] sm:$0xf] %v1248_v51 }
 0x18a PF: > { %s13_s16 = sadd.s32 1, %s1644_s16   ;;  %s2016_s12 = smov %s1632_s13 }
 0x18b   : > { %p10_p12 = scmp.ge.s32.totalorder %s13_s16, 4   ;;  %s2017_s13 = smov %s1706_s22 }
 0x18c   : > { %s2018_s14 = smov %s1640_s15  ;;  %s2019_s15 = smov %s2021_s17 }
 0x18d   :  { %12 = sbr.rel (!%p10_p12) target bundleno = 3 (0x3), region = 163 }

// kernel: vae_forward.5
= control target key start
LH: loop header
LB: loop body
LE: loop exit
PB: predicated region body
PF: predicated region fallthrough
CT: control target
= control target key end

     0   :  { %s1523_s1 = inlined_call_operand.vmem [shape: bf16[768,256], index: 1, kind: input, shape index: {}]   ;;  %s1524_s0 = inlined_call_operand.vmem [shape: bf16[16,256], index: 0, kind: input, shape index: {}]   ;;  %s1525_s2 = inlined_call_operand.vmem [shape: f32[1,768], index: 2, kind: input, shape index: {}]   ;;  %s1526_s3 = inlined_call_operand.vmem [shape: f32[16,768], index: 3, kind: output, shape index: {}]  }
   0x1   :  { %v949_v0 = vld [vmem:[%s1523_s1 + $0x4] ss:$8 sps:$4 sm:$0xff]   ;;  %v951_v1 = vld [vmem:[%s1523_s1] ss:$8 sps:$4 sm:$0xff]   ;;  %v952_v2 = vld [vmem:[%s1523_s1 + $0x14] ss:$8 sps:$4 sm:$0xff]  }
   0x2   :  { %634 = vmatprep.subr.bf16.mxu0 %v949_v0  ;;  %v954_v3 = vld [vmem:[%s1523_s1 + $0x10] ss:$8 sps:$4 sm:$0xff]   ;;  %v955_v4 = vld [vmem:[%s1523_s1 + $0x24] ss:$8 sps:$4 sm:$0xff]   ;;  %v957_v5 = vld [vmem:[%s1523_s1 + $0x20] ss:$8 sps:$4 sm:$0xff]  }
   0x3   :  { %635 = vmatpush1.bf16.xpose.msra.mxu0 %v951_v1  ;;  %v958_v6 = vld [vmem:[%s1523_s1 + $0x34] ss:$8 sps:$4 sm:$0xff]   ;;  %v997_v7 = vld [vmem:[%s1523_s1 + $0x104] ss:$8 sps:$4 sm:$0xff]   ;;  %v999_v8 = vld [vmem:[%s1523_s1 + $0x100] ss:$8 sps:$4 sm:$0xff]  }
   0x4   :  { %636 = vmatprep.subr.bf16.mxu0 %v952_v2  ;;  %v960_v9 = vld [vmem:[%s1523_s1 + $0x30] ss:$8 sps:$4 sm:$0xff]   ;;  %v1197_v10 = vld [vmem:[%s1524_s0 + $0x4] ss:$8 sps:$4 sm:$0xff]   ;;  %677 = vmatprep.subr.bf16.mxu1 %v997_v7  ;;  %v1006_v12 = vld [vmem:[%s1523_s1 + $0x114] ss:$8 sps:$4 sm:$0xff]  }
   0x5   :  { %v961_v11 = vld [vmem:[%s1523_s1 + $0x44] ss:$8 sps:$4 sm:$0xff]   ;;  %678 = vmatpush1.bf16.xpose.msra.mxu1 %v999_v8  ;;  %666 = vmatprep.mubr.bf16.mxu0 %v1197_v10  ;;  %v1008_v13 = vld [vmem:[%s1523_s1 + $0x110] ss:$8 sps:$4 sm:$0xff]   ;;  %v963_v15 = vld [vmem:[%s1523_s1 + $0x40] ss:$8 sps:$4 sm:$0xff]  }
   0x6   :  { %709 = vmatprep.mubr.bf16.mxu1 %v1197_v10  ;;  %679 = vmatprep.subr.bf16.mxu1 %v1006_v12  ;;  %v1012_v14 = vld [vmem:[%s1523_s1 + $0x124] ss:$8 sps:$4 sm:$0xff]   ;;  %v964_v16 = vld [vmem:[%s1523_s1 + $0x54] ss:$8 sps:$4 sm:$0xff]   ;;  %v966_v17 = vld [vmem:[%s1523_s1 + $0x50] ss:$8 sps:$4 sm:$0xff]  }
   0x7   :  { %v1014_v18 = vld [vmem:[%s1523_s1 + $0x120] ss:$8 sps:$4 sm:$0xff]   ;;  %v967_v19 = vld [vmem:[%s1523_s1 + $0x64] ss:$8 sps:$4 sm:$0xff]   ;;  %v1018_v20 = vld [vmem:[%s1523_s1 + $0x134] ss:$8 sps:$4 sm:$0xff]  }
   0x8   :  { %v1020_v21 = vld [vmem:[%s1523_s1 + $0x130] ss:$8 sps:$4 sm:$0xff]   ;;  %v1024_v22 = vld [vmem:[%s1523_s1 + $0x144] ss:$8 sps:$4 sm:$0xff]   ;;  %v969_v23 = vld [vmem:[%s1523_s1 + $0x60] ss:$8 sps:$4 sm:$0xff]  }
   0x9   :  { %v970_v24 = vld [vmem:[%s1523_s1 + $0x74] ss:$8 sps:$4 sm:$0xff]   ;;  %v1026_v25 = vld [vmem:[%s1523_s1 + $0x140] ss:$8 sps:$4 sm:$0xff]   ;;  %v972_v27 = vld [vmem:[%s1523_s1 + $0x70] ss:$8 sps:$4 sm:$0xff]  }
   0xa   :  { %v1030_v26 = vld [vmem:[%s1523_s1 + $0x154] ss:$8 sps:$4 sm:$0xff]   ;;  %v973_v28 = vld [vmem:[%s1523_s1 + $0x84] ss:$8 sps:$4 sm:$0xff]   ;;  %v1032_v29 = vld [vmem:[%s1523_s1 + $0x150] ss:$8 sps:$4 sm:$0xff]  }
   0xb   :  { %637 = vmatpush1.bf16.xpose.msra.mxu0 %v954_v3  ;;  %v1036_v30 = vld [vmem:[%s1523_s1 + $0x164] ss:$8 sps:$4 sm:$0xff]   ;;  %v975_v31 = vld [vmem:[%s1523_s1 + $0x80] ss:$8 sps:$4 sm:$0xff]   ;;  %v976_v32 = vld [vmem:[%s1523_s1 + $0x94] ss:$8 sps:$4 sm:$0xff]  }
   0xc   :  { %638 = vmatprep.subr.bf16.mxu0 %v955_v4  ;;  %v1038_v33 = vld [vmem:[%s1523_s1 + $0x160] ss:$8 sps:$4 sm:$0xff]   ;;  %v1042_v34 = vld [vmem:[%s1523_s1 + $0x174] ss:$8 sps:$4 sm:$0xff]   ;;  %v978_v35 = vld [vmem:[%s1523_s1 + $0x90] ss:$8 sps:$4 sm:$0xff]  }
   0xd   :  { %680 = vmatpush1.bf16.xpose.msra.mxu1 %v1008_v13  ;;  %v979_v36 = vld [vmem:[%s1523_s1 + $0xa4] ss:$8 sps:$4 sm:$0xff]   ;;  %v1044_v37 = vld [vmem:[%s1523_s1 + $0x170] ss:$8 sps:$4 sm:$0xff]   ;;  %v981_v39 = vld [vmem:[%s1523_s1 + $0xa0] ss:$8 sps:$4 sm:$0xff]  }
   0xe   :  { %681 = vmatprep.subr.bf16.mxu1 %v1012_v14  ;;  %v1048_v38 = vld [vmem:[%s1523_s1 + $0x184] ss:$8 sps:$4 sm:$0xff]   ;;  %v982_v40 = vld [vmem:[%s1523_s1 + $0xb4] ss:$8 sps:$4 sm:$0xff]   ;;  %v1050_v41 = vld [vmem:[%s1523_s1 + $0x180] ss:$8 sps:$4 sm:$0xff]  }
   0xf   :  { %v1054_v42 = vld [vmem:[%s1523_s1 + $0x194] ss:$8 sps:$4 sm:$0xff]   ;;  %v984_v43 = vld [vmem:[%s1523_s1 + $0xb0] ss:$8 sps:$4 sm:$0xff]   ;;  %v985_v44 = vld [vmem:[%s1523_s1 + $0xc4] ss:$8 sps:$4 sm:$0xff]  }
  0x10   :  { %v1056_v45 = vld [vmem:[%s1523_s1 + $0x190] ss:$8 sps:$4 sm:$0xff]   ;;  %v1060_v46 = vld [vmem:[%s1523_s1 + $0x1a4] ss:$8 sps:$4 sm:$0xff]   ;;  %v987_v47 = vld [vmem:[%s1523_s1 + $0xc0] ss:$8 sps:$4 sm:$0xff]  }
  0x11   :  { %v988_v48 = vld [vmem:[%s1523_s1 + $0xd4] ss:$8 sps:$4 sm:$0xff]   ;;  %v1062_v49 = vld [vmem:[%s1523_s1 + $0x1a0] ss:$8 sps:$4 sm:$0xff]   ;;  %v990_v51 = vld [vmem:[%s1523_s1 + $0xd0] ss:$8 sps:$4 sm:$0xff]  }
  0x12   :  { %v1066_v50 = vld [vmem:[%s1523_s1 + $0x1b4] ss:$8 sps:$4 sm:$0xff]   ;;  %v991_v52 = vld [vmem:[%s1523_s1 + $0xe4] ss:$8 sps:$4 sm:$0xff]   ;;  %v1068_v53 = vld [vmem:[%s1523_s1 + $0x1b0] ss:$8 sps:$4 sm:$0xff]  }
  0x13   :  { %639 = vmatpush1.bf16.xpose.msra.mxu0 %v957_v5  ;;  %v1072_v54 = vld [vmem:[%s1523_s1 + $0x1c4] ss:$8 sps:$4 sm:$0xff]   ;;  %v993_v55 = vld [vmem:[%s1523_s1 + $0xe0] ss:$8 sps:$4 sm:$0xff]   ;;  %v994_v56 = vld [vmem:[%s1523_s1 + $0xf4] ss:$8 sps:$4 sm:$0xff]  }
  0x14   :  { %640 = vmatprep.subr.bf16.mxu0 %v958_v6  ;;  %v1074_v57 = vld [vmem:[%s1523_s1 + $0x1c0] ss:$8 sps:$4 sm:$0xff]   ;;  %v1078_v58 = vld [vmem:[%s1523_s1 + $0x1d4] ss:$8 sps:$4 sm:$0xff]   ;;  %v996_v59 = vld [vmem:[%s1523_s1 + $0xf0] ss:$8 sps:$4 sm:$0xff]  }
  0x15   :  { %682 = vmatpush1.bf16.xpose.msra.mxu1 %v1014_v18  ;;  %v1005_v60 = vld [vmem:[%s1523_s1 + $0x204] ss:$8 sps:$4 sm:$0xff]   ;;  %v1080_v61 = vld [vmem:[%s1523_s1 + $0x1d0] ss:$8 sps:$4 sm:$0xff]   ;;  %v1357_v62 = vld [vmem:[%s1524_s0] ss:$8 sps:$4 sm:$0xff]  }
  0x16   :  { %683 = vmatprep.subr.bf16.mxu1 %v1018_v20  ;;  %v1084_v63 = vld [vmem:[%s1523_s1 + $0x1e4] ss:$8 sps:$4 sm:$0xff]   ;;  %v1003_v0 = vld [vmem:[%s1523_s1 + $0x200] ss:$8 sps:$4 sm:$0xff]   ;;  %v1011_v1 = vld [vmem:[%s1523_s1 + $0x214] ss:$8 sps:$4 sm:$0xff]  }
  0x17   :  { %v1086_v2 = vld [vmem:[%s1523_s1 + $0x1e0] ss:$8 sps:$4 sm:$0xff]   ;;  %v1090_v3 = vld [vmem:[%s1523_s1 + $0x1f4] ss:$8 sps:$4 sm:$0xff]   ;;  %v1009_v4 = vld [vmem:[%s1523_s1 + $0x210] ss:$8 sps:$4 sm:$0xff]  }
  0x18   :  { %v1017_v5 = vld [vmem:[%s1523_s1 + $0x224] ss:$8 sps:$4 sm:$0xff]   ;;  %v1092_v6 = vld [vmem:[%s1523_s1 + $0x1f0] ss:$8 sps:$4 sm:$0xff]   ;;  %v1015_v7 = vld [vmem:[%s1523_s1 + $0x220] ss:$8 sps:$4 sm:$0xff]  }
  0x19   :  { %v1023_v8 = vld [vmem:[%s1523_s1 + $0x234] ss:$8 sps:$4 sm:$0xff]   ;;  %v1033_v13 = vld [vmem:[%s1523_s1 + $0x250] ss:$8 sps:$4 sm:$0xff]   ;;  %v1041_v14 = vld [vmem:[%s1523_s1 + $0x264] ss:$8 sps:$4 sm:$0xff]  }
  0x1a   :  { %v1035_v12 = vld [vmem:[%s1523_s1 + $0x254] ss:$8 sps:$4 sm:$0xff]   ;;  %v1053_v18 = vld [vmem:[%s1523_s1 + $0x284] ss:$8 sps:$4 sm:$0xff]  }
  0x1b   :  { %641 = vmatpush1.bf16.xpose.msra.mxu0 %v960_v9  ;;  %v1021_v9 = vld [vmem:[%s1523_s1 + $0x230] ss:$8 sps:$4 sm:$0xff]   ;;  %v1059_v20 = vld [vmem:[%s1523_s1 + $0x294] ss:$8 sps:$4 sm:$0xff]  }
  0x1c   :  { %642 = vmatprep.subr.bf16.mxu0 %v961_v11  ;;  %v1027_v11 = vld [vmem:[%s1523_s1 + $0x240] ss:$8 sps:$4 sm:$0xff]  }
  0x1d   :  { %684 = vmatpush1.bf16.xpose.msra.mxu1 %v1020_v21  ;;  %v1057_v21 = vld [vmem:[%s1523_s1 + $0x290] ss:$8 sps:$4 sm:$0xff]  }
  0x1e   :  { %685 = vmatprep.subr.bf16.mxu1 %v1024_v22  ;;  %v1065_v22 = vld [vmem:[%s1523_s1 + $0x2a4] ss:$8 sps:$4 sm:$0xff]  }
  0x23   :  { %643 = vmatpush1.bf16.xpose.msra.mxu0 %v963_v15  ;;  %v1039_v15 = vld [vmem:[%s1523_s1 + $0x260] ss:$8 sps:$4 sm:$0xff]  }
  0x24   :  { %644 = vmatprep.subr.bf16.mxu0 %v964_v16  ;;  %v1047_v16 = vld [vmem:[%s1523_s1 + $0x274] ss:$8 sps:$4 sm:$0xff]  }
  0x25   :  { %686 = vmatpush1.bf16.xpose.msra.mxu1 %v1026_v25  ;;  %v1069_v25 = vld [vmem:[%s1523_s1 + $0x2b0] ss:$8 sps:$4 sm:$0xff]  }
  0x26   :  { %687 = vmatprep.subr.bf16.mxu1 %v1030_v26  ;;  %v1077_v26 = vld [vmem:[%s1523_s1 + $0x2c4] ss:$8 sps:$4 sm:$0xff]  }
  0x2b   :  { %645 = vmatpush1.bf16.xpose.msra.mxu0 %v966_v17  ;;  %v1045_v17 = vld [vmem:[%s1523_s1 + $0x270] ss:$8 sps:$4 sm:$0xff]  }
  0x2c   :  { %646 = vmatprep.subr.bf16.mxu0 %v967_v19  ;;  %v1051_v19 = vld [vmem:[%s1523_s1 + $0x280] ss:$8 sps:$4 sm:$0xff]  }
  0x2d   :  { %688 = vmatpush1.bf16.xpose.msra.mxu1 %v1032_v29  ;;  %v1081_v29 = vld [vmem:[%s1523_s1 + $0x2d0] ss:$8 sps:$4 sm:$0xff]  }
  0x2e   :  { %689 = vmatprep.subr.bf16.mxu1 %v1036_v30  ;;  %v1089_v30 = vld [vmem:[%s1523_s1 + $0x2e4] ss:$8 sps:$4 sm:$0xff]  }
  0x33   :  { %647 = vmatpush1.bf16.xpose.msra.mxu0 %v969_v23  ;;  %v1063_v23 = vld [vmem:[%s1523_s1 + $0x2a0] ss:$8 sps:$4 sm:$0xff]  }
  0x34   :  { %648 = vmatprep.subr.bf16.mxu0 %v970_v24  ;;  %v1071_v24 = vld [vmem:[%s1523_s1 + $0x2b4] ss:$8 sps:$4 sm:$0xff]  }
  0x35   :  { %690 = vmatpush1.bf16.xpose.msra.mxu1 %v1038_v33  ;;  %v1093_v33 = vld [vmem:[%s1523_s1 + $0x2f0] ss:$8 sps:$4 sm:$0xff]  }
  0x36   :  { %691 = vmatprep.subr.bf16.mxu1 %v1042_v34  ;;  %v114_v34 = vlaneseq }
  0x3b   :  { %649 = vmatpush1.bf16.xpose.msra.mxu0 %v972_v27  ;;  %v1075_v27 = vld [vmem:[%s1523_s1 + $0x2c0] ss:$8 sps:$4 sm:$0xff]  }
  0x3c   :  { %650 = vmatprep.subr.bf16.mxu0 %v973_v28  ;;  %v1083_v28 = vld [vmem:[%s1523_s1 + $0x2d4] ss:$8 sps:$4 sm:$0xff]  }
  0x3d   :  { %692 = vmatpush1.bf16.xpose.msra.mxu1 %v1044_v37  ;;  %v1474_v37 = vld [vmem:[%s1525_s2] sm:$0x3f] }
  0x3e   :  { %693 = vmatprep.subr.bf16.mxu1 %v1048_v38 }
  0x43   :  { %651 = vmatpush1.bf16.xpose.msra.mxu0 %v975_v31  ;;  %v1087_v31 = vld [vmem:[%s1523_s1 + $0x2e0] ss:$8 sps:$4 sm:$0xff]  }
  0x44   :  { %652 = vmatprep.subr.bf16.mxu0 %v976_v32  ;;  %v1095_v32 = vld [vmem:[%s1523_s1 + $0x2f4] ss:$8 sps:$4 sm:$0xff]  }
  0x45   :  { %694 = vmatpush1.bf16.xpose.msra.mxu1 %v1050_v41 }
  0x46   :  { %695 = vmatprep.subr.bf16.mxu1 %v1054_v42 }
  0x4b   :  { %653 = vmatpush1.bf16.xpose.msra.mxu0 %v978_v35  ;;  %v1468_v35 = vshrl.u32 %v114_v34, 7 }
  0x4c   :  { %654 = vmatprep.subr.bf16.mxu0 %v979_v36 }
  0x4d   :  { %696 = vmatpush1.bf16.xpose.msra.mxu1 %v1056_v45  ;;  %v116_v36 = vsub.s32 0, %v1468_v35  ;;  %v120_v38 = vsub.s32 1, %v1468_v35 }
  0x4e   :  { %697 = vmatprep.subr.bf16.mxu1 %v1060_v46 }
  0x53   :  { %655 = vmatpush1.bf16.xpose.msra.mxu0 %v981_v39  ;;  %v117_v39 = vrot.slane %v1474_v37, %v116_v36 }
  0x54   :  { %656 = vmatprep.subr.bf16.mxu0 %v982_v40  ;;  %v121_v40 = vrot.slane %v1474_v37, %v120_v38 }
  0x55   :  { %698 = vmatpush1.bf16.xpose.msra.mxu1 %v1062_v49 }
  0x56   :  { %699 = vmatprep.subr.bf16.mxu1 %v1066_v50 }
  0x5b   :  { %657 = vmatpush1.bf16.xpose.msra.mxu0 %v984_v43 }
  0x5c   :  { %658 = vmatprep.subr.bf16.mxu0 %v985_v44 }
  0x5d   :  { %700 = vmatpush1.bf16.xpose.msra.mxu1 %v1068_v53 }
  0x5e   :  { %701 = vmatprep.subr.bf16.mxu1 %v1072_v54 }
  0x63   :  { %659 = vmatpush1.bf16.xpose.msra.mxu0 %v987_v47 }
  0x64   :  { %660 = vmatprep.subr.bf16.mxu0 %v988_v48 }
  0x65   :  { %702 = vmatpush1.bf16.xpose.msra.mxu1 %v1074_v57  ;;  %v124_v57 = vsub.s32 2, %v1468_v35 }
  0x66   :  { %703 = vmatprep.subr.bf16.mxu1 %v1078_v58  ;;  %v128_v58 = vsub.s32 3, %v1468_v35 }
  0x6b   :  { %661 = vmatpush1.bf16.xpose.msra.mxu0 %v990_v51 }
  0x6c   :  { %662 = vmatprep.subr.bf16.mxu0 %v991_v52 }
  0x6d   :  { %704 = vmatpush1.bf16.xpose.msra.mxu1 %v1080_v61 }
  0x6e   :  { %705 = vmatprep.subr.bf16.mxu1 %v1084_v63 }
  0x73   :  { %663 = vmatpush1.bf16.xpose.msra.mxu0 %v993_v55 }
  0x74   :  { %664 = vmatprep.subr.bf16.mxu0 %v994_v56 }
  0x75   :  { %706 = vmatpush1.bf16.xpose.msra.mxu1 %v1086_v2 }
  0x76   :  { %707 = vmatprep.subr.bf16.mxu1 %v1090_v3  ;;  %v129_v3 = vrot.slane %v1474_v37, %v128_v58 }
  0x7b   :  { %665 = vmatpush1.bf16.xpose.msra.mxu0 %v996_v59 }
  0x7c   :  { %720 = vmatprep.subr.bf16.mxu0 %v1005_v60 }
  0x7d   :  { %708 = vmatpush1.bf16.xpose.msra.mxu1 %v1092_v6 }
  0x82   :  { %667 = vmatmul.mubr.bf16.vlgmr.msra.gmra.mrb[0].mxu0 %v1357_v62 }
  0x83   :  { %721 = vmatpush1.bf16.xpose.msra.mxu0 %v1003_v0  ;;  %752 = vmatprep.mubr.bf16.mxu0 %v1197_v10  ;;  %v1029_v10 = vld [vmem:[%s1523_s1 + $0x244] ss:$8 sps:$4 sm:$0xff]   ;;  %v125_v0 = vrot.slane %v1474_v37, %v124_v57 }
  0x84   :  { %722 = vmatprep.subr.bf16.mxu0 %v1011_v1  ;;  %710 = vmatmul.mubr.bf16.vlgmr.msra.gmra.mrb[0].mxu1 %v1357_v62 }
  0x8b   :  { %723 = vmatpush1.bf16.xpose.msra.mxu0 %v1009_v4 }
  0x8c   :  { %724 = vmatprep.subr.bf16.mxu0 %v1017_v5 }
  0x93   :  { %725 = vmatpush1.bf16.xpose.msra.mxu0 %v1015_v7 }
  0x94   :  { %726 = vmatprep.subr.bf16.mxu0 %v1023_v8 }
  0x9b   :  { %727 = vmatpush1.bf16.xpose.msra.mxu0 %v1021_v9 }
  0x9c   :  { %728 = vmatprep.subr.bf16.mxu0 %v1029_v10 }
  0xa3   :  { %729 = vmatpush1.bf16.xpose.msra.mxu0 %v1027_v11 }
  0xa4   :  { %730 = vmatprep.subr.bf16.mxu0 %v1035_v12 }
  0xab   :  { %731 = vmatpush1.bf16.xpose.msra.mxu0 %v1033_v13 }
  0xac   :  { %732 = vmatprep.subr.bf16.mxu0 %v1041_v14 }
  0xb3   :  { %733 = vmatpush1.bf16.xpose.msra.mxu0 %v1039_v15 }
  0xb4   :  { %734 = vmatprep.subr.bf16.mxu0 %v1047_v16 }
  0xbb   :  { %735 = vmatpush1.bf16.xpose.msra.mxu0 %v1045_v17 }
  0xbc   :  { %736 = vmatprep.subr.bf16.mxu0 %v1053_v18 }
  0xc3   :  { %737 = vmatpush1.bf16.xpose.msra.mxu0 %v1051_v19 }
  0xc4   :  { %738 = vmatprep.subr.bf16.mxu0 %v1059_v20 }
  0xcb   :  { %739 = vmatpush1.bf16.xpose.msra.mxu0 %v1057_v21 }
  0xcc   :  { %740 = vmatprep.subr.bf16.mxu0 %v1065_v22 }
  0xd3   :  { %741 = vmatpush1.bf16.xpose.msra.mxu0 %v1063_v23 }
  0xd4   :  { %742 = vmatprep.subr.bf16.mxu0 %v1071_v24 }
  0xdb   :  { %743 = vmatpush1.bf16.xpose.msra.mxu0 %v1069_v25 }
  0xdc   :  { %744 = vmatprep.subr.bf16.mxu0 %v1077_v26 }
  0xe3   :  { %745 = vmatpush1.bf16.xpose.msra.mxu0 %v1075_v27 }
  0xe4   :  { %746 = vmatprep.subr.bf16.mxu0 %v1083_v28 }
  0xeb   :  { %747 = vmatpush1.bf16.xpose.msra.mxu0 %v1081_v29 }
  0xec   :  { %748 = vmatprep.subr.bf16.mxu0 %v1089_v30 }
  0xf3   :  { %749 = vmatpush1.bf16.xpose.msra.mxu0 %v1087_v31 }
  0xf4   :  { %750 = vmatprep.subr.bf16.mxu0 %v1095_v32 }
  0xfb   :  { %751 = vmatpush1.bf16.xpose.msra.mxu0 %v1093_v33 }
 0x102   :  { %753 = vmatmul.mubr.bf16.vlgmr.msra.gmra.mrb[4].mxu0 %v1357_v62 }
 0x155   :  { %v668_v41 = vpop.f32.mrb[0].mxu0 }
 0x156   :  { %v669_v42 = vadd.f32 %v668_v41, %v117_v39  ;;  %v670_v43 = vpop.f32.mrb[1].mxu0 }
 0x157   :  { %v671_v44 = vadd.f32 %v670_v43, %v121_v40  ;;  %v672_v45 = vpop.f32.mrb[2].mxu0  ;;  %v711_v5 = vpop.f32.mrb[0].mxu1 }
 0x158   :  { %v763_v46 = vsub.f32 0.0, %v669_v42  ;;  %v673_v47 = vadd.f32 %v672_v45, %v117_v39  ;;  %v674_v48 = vpop.f32.mrb[3].mxu0  ;;  %v712_v6 = vadd.f32 %v711_v5, %v125_v0  ;;  %v713_v7 = vpop.f32.mrb[1].mxu1  ;;  %v132_v39 = vsub.s32 4, %v1468_v35 }
 0x159   :  { %v764_v49 = vsub.f32 0.0, %v671_v44  ;;  %v675_v50 = vadd.f32 %v674_v48, %v121_v40  ;;  %v714_v8 = vadd.f32 %v713_v7, %v129_v3  ;;  %v715_v9 = vpop.f32.mrb[2].mxu1  ;;  %v136_v40 = vsub.s32 5, %v1468_v35 }
 0x15a   :  { %v775_v51 = vmul.f32 1.442695, %v763_v46  ;;  %v769_v52 = vsub.f32 0.0, %v673_v47  ;;  %v765_v10 = vsub.f32 0.0, %v712_v6  ;;  %v716_v11 = vadd.f32 %v715_v9, %v125_v0  ;;  %v717_v12 = vpop.f32.mrb[3].mxu1 }
 0x15b   :  { %v777_v53 = vmul.f32 1.442695, %v764_v49  ;;  %v770_v54 = vsub.f32 0.0, %v675_v50  ;;  %v766_v13 = vsub.f32 0.0, %v714_v8  ;;  %v718_v14 = vadd.f32 %v717_v12, %v129_v3 }
 0x15c   :  { %1096 = vpow2.f32 %v775_v51  ;;  %v787_v55 = vmul.f32 1.442695, %v769_v52  ;;  %v779_v15 = vmul.f32 1.442695, %v765_v10  ;;  %v771_v16 = vsub.f32 0.0, %v716_v11 }
 0x15d   :  { %1098 = vpow2.f32 %v777_v53  ;;  %v789_v56 = vmul.f32 1.442695, %v770_v54  ;;  %v781_v17 = vmul.f32 1.442695, %v766_v13  ;;  %v772_v18 = vsub.f32 0.0, %v718_v14 }
 0x15e   :  { %1100 = vpow2.f32 %v787_v55  ;;  %v791_v19 = vmul.f32 1.442695, %v771_v16  ;;  %v133_v41 = vrot.slane %v1474_v37, %v132_v39  ;;  %v137_v42 = vrot.slane %v1474_v37, %v136_v40 }
 0x15f   :  { %1102 = vpow2.f32 %v789_v56  ;;  %v793_v21 = vmul.f32 1.442695, %v772_v18 }
 0x166   :  { %v1097_v59 = vpop.eup %1096 }
 0x167   :  { %v1099_v60 = vpop.eup %1098  ;;  %v799_v61 = vadd.f32 1.0, %v1097_v59 }
 0x168   :  { %v1101_v62 = vpop.eup %1100  ;;  %v800_v63 = vadd.f32 1.0, %v1099_v60 }
 0x169   :  { %v1103_v1 = vpop.eup %1102  ;;  %1104 = vrcp.f32 %v799_v61  ;;  %v805_v2 = vadd.f32 1.0, %v1101_v62 }
 0x16a   :  { %1106 = vrcp.f32 %v800_v63  ;;  %v806_v4 = vadd.f32 1.0, %v1103_v1 }
 0x16b   :  { %1108 = vrcp.f32 %v805_v2 }
 0x16c   :  { %1110 = vrcp.f32 %v806_v4 }
 0x16d   :  { %1112 = vpow2.f32 %v779_v15 }
 0x16e   :  { %1114 = vpow2.f32 %v781_v17 }
 0x16f   :  { %1116 = vpow2.f32 %v791_v19 }
 0x170   :  { %1118 = vpow2.f32 %v793_v21 }
 0x173   :  { %v1105_v20 = vpop.eup %1104 }
 0x174   :  { %v1107_v22 = vpop.eup %1106  ;;  %835 = vst [vmem:[%s1526_s3] sm:$0xff] %v1105_v20 }
 0x175   :  { %v1109_v23 = vpop.eup %1108  ;;  %836 = vst [vmem:[%s1526_s3 + $0x8] sm:$0xff] %v1107_v22 }
 0x176   :  { %v1111_v24 = vpop.eup %1110  ;;  %841 = vst [vmem:[%s1526_s3 + $0x30] sm:$0xff] %v1109_v23 }
 0x177   :  { %842 = vst [vmem:[%s1526_s3 + $0x38] sm:$0xff] %v1111_v24  ;;  %v1113_v25 = vpop.eup %1112 }
 0x178   :  { %v1115_v26 = vpop.eup %1114  ;;  %v801_v27 = vadd.f32 1.0, %v1113_v25 }
 0x179   :  { %v1117_v28 = vpop.eup %1116  ;;  %v802_v29 = vadd.f32 1.0, %v1115_v26 }
 0x17a   :  { %v1119_v30 = vpop.eup %1118  ;;  %1120 = vrcp.f32 %v801_v27  ;;  %v807_v31 = vadd.f32 1.0, %v1117_v28 }
 0x17b   :  { %1122 = vrcp.f32 %v802_v29  ;;  %v808_v32 = vadd.f32 1.0, %v1119_v30 }
 0x17c   :  { %1124 = vrcp.f32 %v807_v31 }
 0x17d   :  { %1126 = vrcp.f32 %v808_v32 }
 0x184   :  { %v1121_v33 = vpop.eup %1120 }
 0x185   :  { %v1123_v34 = vpop.eup %1122  ;;  %837 = vst [vmem:[%s1526_s3 + $0x10] sm:$0xff] %v1121_v33 }
 0x186   :  { %v1125_v36 = vpop.eup %1124  ;;  %838 = vst [vmem:[%s1526_s3 + $0x18] sm:$0xff] %v1123_v34 }
 0x187   :  { %v1127_v38 = vpop.eup %1126  ;;  %843 = vst [vmem:[%s1526_s3 + $0x40] sm:$0xff] %v1125_v36 }
 0x188   :  { %844 = vst [vmem:[%s1526_s3 + $0x48] sm:$0xff] %v1127_v38 }
 0x1d5   :  { %v754_v43 = vpop.f32.mrb[4].mxu0 }
 0x1d6   :  { %v755_v44 = vadd.f32 %v754_v43, %v133_v41  ;;  %v756_v45 = vpop.f32.mrb[5].mxu0 }
 0x1d7   :  { %v757_v46 = vadd.f32 %v756_v45, %v137_v42  ;;  %v758_v47 = vpop.f32.mrb[6].mxu0 }
 0x1d8   :  { %v767_v48 = vsub.f32 0.0, %v755_v44  ;;  %v759_v49 = vadd.f32 %v758_v47, %v133_v41  ;;  %v760_v50 = vpop.f32.mrb[7].mxu0 }
 0x1d9   :  { %v768_v51 = vsub.f32 0.0, %v757_v46  ;;  %v761_v52 = vadd.f32 %v760_v50, %v137_v42 }
 0x1da   :  { %v783_v53 = vmul.f32 1.442695, %v767_v48  ;;  %v773_v54 = vsub.f32 0.0, %v759_v49 }
 0x1db   :  { %v785_v55 = vmul.f32 1.442695, %v768_v51  ;;  %v774_v56 = vsub.f32 0.0, %v761_v52 }
 0x1dc   :  { %1128 = vpow2.f32 %v783_v53  ;;  %v795_v35 = vmul.f32 1.442695, %v773_v54 }
 0x1dd   :  { %1130 = vpow2.f32 %v785_v55  ;;  %v797_v57 = vmul.f32 1.442695, %v774_v56 }
 0x1de   :  { %1132 = vpow2.f32 %v795_v35 }
 0x1df   :  { %1134 = vpow2.f32 %v797_v57 }
 0x1e6   :  { %v1129_v37 = vpop.eup %1128 }
 0x1e7   :  { %v1131_v58 = vpop.eup %1130  ;;  %v803_v59 = vadd.f32 1.0, %v1129_v37 }
 0x1e8   :  { %v1133_v60 = vpop.eup %1132  ;;  %v804_v61 = vadd.f32 1.0, %v1131_v58 }
 0x1e9   :  { %v1135_v62 = vpop.eup %1134  ;;  %1136 = vrcp.f32 %v803_v59  ;;  %v809_v63 = vadd.f32 1.0, %v1133_v60 }
 0x1ea   :  { %1138 = vrcp.f32 %v804_v61  ;;  %v810_v0 = vadd.f32 1.0, %v1135_v62 }
 0x1eb   :  { %1140 = vrcp.f32 %v809_v63 }
 0x1ec   :  { %1142 = vrcp.f32 %v810_v0 }
 0x1f3   :  { %v1137_v1 = vpop.eup %1136 }
 0x1f4   :  { %v1139_v2 = vpop.eup %1138  ;;  %839 = vst [vmem:[%s1526_s3 + $0x20] sm:$0xff] %v1137_v1 }
 0x1f5   :  { %v1141_v3 = vpop.eup %1140  ;;  %840 = vst [vmem:[%s1526_s3 + $0x28] sm:$0xff] %v1139_v2 }
 0x1f6   :  { %v1143_v4 = vpop.eup %1142  ;;  %845 = vst [vmem:[%s1526_s3 + $0x50] sm:$0xff] %v1141_v3 }
 0x1f7   :  { %846 = vst [vmem:[%s1526_s3 + $0x58] sm:$0xff] %v1143_v4 }

</bundles_post_ra>
